<compile_context>
chip_gen: v6e
topology: v6e:2x2x1
jax: 0.10.0
libtpu: 0.0.40
codegen_flags: <defaults>
</compile_context>

<pallas_src>
import jax
import jax.numpy as jnp
import numpy as np
from jax.experimental import pallas as pl
from jax.experimental.pallas import tpu as pltpu


_IMG_CHUNK = 8   # images assembled in registers between feature-scratch stores


# ------------------------------ fused kernel -------------------------------
def _fused_kernel(x_ref,
                  wc_ref, bc_ref,
                  w1s_ref, b1_ref, w2_ref, b2_ref, w3_ref, b3_ref,
                  w4_ref, b4_ref,
                  out_ref, feats_ref):
    # x_ref:     (B*C, HW)   this step's images, NCHW rows flattened, lane=HW
    # wc_ref:    (F, C), bc_ref: (F, 1)          1x1-conv weight / bias
    # wN_ref:    (out, in), bN_ref: (out, 1)     MLP head (PyTorch layout);
    #                                            w1s already includes the scale
    # out_ref:   (1, 1, B)   lane-dense per-step output tile
    # feats_ref: (B, F)      VMEM scratch, pooled features (one row per image)
    BC, HW = x_ref.shape
    F, C = wc_ref.shape
    B = BC // C
    CH = _IMG_CHUNK
    n_chunks = B // CH                                 # B is a multiple of CH

    wc = wc_ref[...]                                   # (F, C)
    bc = bc_ref[...]                                   # (F, 1)
    inv_hw = 1.0 / HW
    ones_hw = jnp.ones((1, HW), jnp.float32)           # hoisted, loop-invariant
    sub_ids = jax.lax.broadcasted_iota(jnp.int32, (CH, 1), 0)
    onehots = [(sub_ids == j).astype(jnp.float32) for j in range(CH)]
    # Small-C conv on the VPU only while B is small (v5e-friendly); once B is
    # large the MXU is otherwise idle during the backend phase, so use it.
    use_mxu_conv = (C > 8) or (B >= 64)

    # ---- backend stand-in: 1x1 conv + ReLU + global average pool ----------
    def chunk_body(ci, carry):
        row0 = pl.multiple_of(ci * (CH * C), CH * C)
        xc = x_ref[pl.ds(row0, CH * C), :]             # (CH*C, HW) aligned load
        chunk = jnp.zeros((CH, F), jnp.float32)
        for j in range(CH):                            # short, bounded unroll
            x_i = xc[j * C:(j + 1) * C, :]             # (C, HW), static slice
            if use_mxu_conv:
                y = jnp.dot(wc, x_i, preferred_element_type=jnp.float32)
            else:
                y = wc[:, 0:1] * x_i[0:1, :]           # (F,1)*(1,HW)->(F,HW)
                for c in range(1, C):
                    y = y + wc[:, c:c + 1] * x_i[c:c + 1, :]
            y = jnp.maximum(y + bc, 0.0)               # (F, HW)
            # Global average pool as an MXU "NT" matmul: result is a lane-major
            # (1, F) row, so no sublane->lane relayout is ever needed.
            pooled = jax.lax.dot_general(
                ones_hw, y, (((1,), (1,)), ((), ())),
                preferred_element_type=jnp.float32) * inv_hw      # (1, F)
            chunk = chunk + onehots[j] * pooled        # place row j, O(CH*F)
        feats_ref[pl.ds(pl.multiple_of(ci * CH, CH), CH), :] = chunk
        return carry

    jax.lax.fori_loop(0, n_chunks, chunk_body, 0)

    # ---- MLP head, column orientation (out, B): B stays on the lane dim ---
    feats = feats_ref[...]                             # (B, F)
    h = jax.lax.dot_general(                           # == (scale*W1) @ feats.T
        w1s_ref[...], feats, (((1,), (1,)), ((), ())),
        preferred_element_type=jnp.float32) + b1_ref[...]
    h = jnp.maximum(h, 0.0)                            # (128, B)
    h = jnp.maximum(
        jnp.dot(w2_ref[...], h, preferred_element_type=jnp.float32)
        + b2_ref[...], 0.0)                            # (64, B)
    h = jnp.maximum(
        jnp.dot(w3_ref[...], h, preferred_element_type=jnp.float32)
        + b3_ref[...], 0.0)                            # (32, B)
    out_ref[0] = (jnp.dot(w4_ref[...], h, preferred_element_type=jnp.float32)
                  + b4_ref[...])                       # (1, B) lane-dense


# -------------------------------- wrapper ----------------------------------
def _round_up(x, m):
    return ((x + m - 1) // m) * m


def _choose_block(n, c, hw, f, max_b=512, vmem_budget_bytes=24 * 1024 * 1024):
    """Images per grid step: multiple of 8, VMEM-sized, >= 2 steps if possible."""
    # Per-image VMEM that scales with B: double-buffered x rows, a feats-scratch
    # row and the double-buffered output element (all f32).
    per_img = 2 * c * hw * 4 + f * 4 + 2 * 4
    cap = max(8, (vmem_budget_bytes // per_img) // 8 * 8)
    cap = min(cap, max_b)
    n8 = _round_up(max(n, 1), 8)
    if n8 > 8:
        # Keep at least two grid steps so the "parallel" axis can shard across
        # TensorCores (v7x megacore) and per-step VMEM stays lower.
        cap = min(cap, max(8, _round_up((n8 + 1) // 2, 8)))
    return min(cap, n8)


def ct_multiplied_scale_weight_regressor_2d(x_nchw, params, scaling_factor=1.0):
    N, C, H, W = x_nchw.shape
    HW = H * W
    F = params["w_conv"].shape[0]

    B = _choose_block(N, C, HW, F)
    G = -(-N // B)                        # cdiv
    Npad = G * B

    x = x_nchw.reshape(N, C, HW)          # free view, native NCHW order
    if Npad != N:
        x = jnp.pad(x, ((0, Npad - N), (0, 0), (0, 0)))
    x_flat = x.reshape(Npad * C, HW)      # free view: dense 2-D (rows, HW)

    # Fold the scaling factor into the first head layer (exact: it is linear).
    w1s = params["w1"] * jnp.float32(scaling_factor)

    def resident(p):                      # whole array, VMEM-resident every step
        return pl.BlockSpec(p.shape, lambda g: (0, 0))

    head_flops = sum(2 * params[f"w{i}"].shape[0] * params[f"w{i}"].shape[1]
                     for i in range(1, 5))
    flops = Npad * (2 * HW * C * F        # 1x1 conv
                    + F * HW              # bias + relu
                    + 2 * F * HW          # pooling matmul
                    + head_flops)
    bytes_accessed = 4 * (int(x_flat.size)
                          + sum(int(p.size) for p in params.values())
                          + Npad)

    out3 = pl.pallas_call(
        _fused_kernel,
        out_shape=jax.ShapeDtypeStruct((G, 1, B), jnp.float32),
        grid=(G,),
        in_specs=[
            pl.BlockSpec((B * C, HW), lambda g: (g, 0)),          # images
            resident(params["w_conv"]), resident(params["b_conv"]),
            resident(w1s), resident(params["b1"]),
            resident(params["w2"]), resident(params["b2"]),
            resident(params["w3"]), resident(params["b3"]),
            resident(params["w4"]), resident(params["b4"]),
        ],
        out_specs=pl.BlockSpec((1, 1, B), lambda g: (g, 0, 0)),
        scratch_shapes=[pltpu.VMEM((B, F), jnp.float32)],
        compiler_params=pltpu.CompilerParams(
            dimension_semantics=("parallel",),
            vmem_limit_bytes=48 * 1024 * 1024),
        cost_estimate=pl.CostEstimate(
            flops=int(flops), transcendentals=0,
            bytes_accessed=int(bytes_accessed)),
    )(x_flat,
      params["w_conv"], params["b_conv"],
      w1s, params["b1"], params["w2"], params["b2"],
      params["w3"], params["b3"], params["w4"], params["b4"])
    return out3.reshape(Npad)[:N].reshape(N, 1)


# ------------------------------ param init ---------------------------------
def init_params(key, in_channels, feature_dim, fc_layers=(128, 64, 32)):
    keys = jax.random.split(key, 12)
    params = {
        # PyTorch-style (out, in) layouts; biases stored as (out, 1) columns.
        "w_conv": 0.1 * jax.random.normal(
            keys[0], (feature_dim, in_channels), jnp.float32),
        "b_conv": 0.1 * jax.random.normal(
            keys[1], (feature_dim, 1), jnp.float32),
    }
    dims = [feature_dim] + list(fc_layers) + [1]
    for i in range(4):
        fan_in, fan_out = dims[i], dims[i + 1]
        params[f"w{i+1}"] = (1.0 / np.sqrt(fan_in)) * jax.random.normal(
            keys[2 + 2 * i], (fan_out, fan_in), jnp.float32)
        params[f"b{i+1}"] = (1.0 / np.sqrt(fan_in)) * jax.random.normal(
            keys[3 + 2 * i], (fan_out, 1), jnp.float32)
    return params


# ------------------------------ reference ----------------------------------
def reference_forward(x_nchw, params, scaling_factor=1.0):
    N, C, H, W = x_nchw.shape
    x = x_nchw.reshape(N, C, H * W)
    y = jnp.einsum("ncp,fc->nfp", x, params["w_conv"]) + params["b_conv"][None]
    y = jnp.maximum(y, 0.0)
    feats = jnp.mean(y, axis=2)                        # (N, F)
    h = feats * scaling_factor
    h = jnp.maximum(h @ params["w1"].T + params["b1"][:, 0], 0.0)
    h = jnp.maximum(h @ params["w2"].T + params["b2"][:, 0], 0.0)
    h = jnp.maximum(h @ params["w3"].T + params["b3"][:, 0], 0.0)
    return h @ params["w4"].T + params["b4"][:, 0]


if __name__ == "__main__":
    key = jax.random.PRNGKey(0)
    k_x, k_p = jax.random.split(key)

    N, C, H, W = 2, 4, 16, 16
    FEATURE_DIM = 32
    x = jax.random.normal(k_x, (N, C, H, W), jnp.float32)
    params = init_params(k_p, C, FEATURE_DIM)

    scaling_factor = 1.5
    out = ct_multiplied_scale_weight_regressor_2d(x, params, scaling_factor)
    out = jax.block_until_ready(out)

    ref = reference_forward(x, params, scaling_factor)
    np.testing.assert_allclose(np.asarray(out), np.asarray(ref),
                               rtol=1e-4, atol=1e-4)
    assert out.shape == (N, 1)
    print("KERNEL_OK")
</pallas_src>

<mosaic_0001>
module attributes {stable_mosaic.version = 11 : i64} {
  func.func @_fused_kernel(%arg0: i32, %arg1: memref<32x256xf32, #tpu.memory_space<vmem>>, %arg2: memref<32x4xf32, #tpu.memory_space<vmem>>, %arg3: memref<32x1xf32, #tpu.memory_space<vmem>>, %arg4: memref<128x32xf32, #tpu.memory_space<vmem>>, %arg5: memref<128x1xf32, #tpu.memory_space<vmem>>, %arg6: memref<64x128xf32, #tpu.memory_space<vmem>>, %arg7: memref<64x1xf32, #tpu.memory_space<vmem>>, %arg8: memref<32x64xf32, #tpu.memory_space<vmem>>, %arg9: memref<32x1xf32, #tpu.memory_space<vmem>>, %arg10: memref<1x32xf32, #tpu.memory_space<vmem>>, %arg11: memref<1x1xf32, #tpu.memory_space<vmem>>, %arg12: memref<1x1x8xf32, #tpu.memory_space<vmem>>, %arg13: memref<8x32xf32, #tpu.memory_space<vmem>>) attributes {dimension_semantics = [#tpu.dimension_semantics<parallel>], iteration_bounds = array<i64: 1>, scalar_prefetch = 0 : i64, scratch_operands = 1 : i64, tpu.core_type = #tpu.core_type<tc>, window_params = [{transform_indices = @transform_0, window_bounds = array<i64: 32, 256>}, {pipeline_mode = #tpu.pipeline_mode<synchronous>, transform_indices = @transform_1, window_bounds = array<i64: 32, 4>}, {pipeline_mode = #tpu.pipeline_mode<synchronous>, transform_indices = @transform_2, window_bounds = array<i64: 32, 1>}, {pipeline_mode = #tpu.pipeline_mode<synchronous>, transform_indices = @transform_3, window_bounds = array<i64: 128, 32>}, {pipeline_mode = #tpu.pipeline_mode<synchronous>, transform_indices = @transform_4, window_bounds = array<i64: 128, 1>}, {pipeline_mode = #tpu.pipeline_mode<synchronous>, transform_indices = @transform_5, window_bounds = array<i64: 64, 128>}, {pipeline_mode = #tpu.pipeline_mode<synchronous>, transform_indices = @transform_6, window_bounds = array<i64: 64, 1>}, {pipeline_mode = #tpu.pipeline_mode<synchronous>, transform_indices = @transform_7, window_bounds = array<i64: 32, 64>}, {pipeline_mode = #tpu.pipeline_mode<synchronous>, transform_indices = @transform_8, window_bounds = array<i64: 32, 1>}, {pipeline_mode = #tpu.pipeline_mode<synchronous>, transform_indices = @transform_9, window_bounds = array<i64: 1, 32>}, {pipeline_mode = #tpu.pipeline_mode<synchronous>, transform_indices = @transform_10, window_bounds = array<i64: 1, 1>}, {transform_indices = @transform_11, window_bounds = array<i64: 1, 1, 8>}]} {
    %c0 = arith.constant 0 : index
    %c0_0 = arith.constant 0 : index
    %0 = vector.load %arg2[%c0, %c0_0] : memref<32x4xf32, #tpu.memory_space<vmem>>, vector<32x4xf32>
    %c0_1 = arith.constant 0 : index
    %c0_2 = arith.constant 0 : index
    %1 = vector.load %arg3[%c0_1, %c0_2] : memref<32x1xf32, #tpu.memory_space<vmem>>, vector<32x1xf32>
    %cst = arith.constant 1.000000e+00 : f32
    %2 = vector.broadcast %cst : f32 to vector<1x256xf32>
    %3 = tpu.iota {dimensions = array<i32: 0>} : vector<8x1xi32>
    %c0_i32 = arith.constant 0 : i32
    %4 = vector.broadcast %c0_i32 : i32 to vector<8x1xi32>
    %5 = arith.cmpi eq, %3, %4 : vector<8x1xi32>
    %6 = arith.extui %5 : vector<8x1xi1> to vector<8x1xi32>
    %7 = arith.sitofp %6 : vector<8x1xi32> to vector<8x1xf32>
    %c1_i32 = arith.constant 1 : i32
    %8 = vector.broadcast %c1_i32 : i32 to vector<8x1xi32>
    %9 = arith.cmpi eq, %3, %8 : vector<8x1xi32>
    %10 = arith.extui %9 : vector<8x1xi1> to vector<8x1xi32>
    %11 = arith.sitofp %10 : vector<8x1xi32> to vector<8x1xf32>
    %c2_i32 = arith.constant 2 : i32
    %12 = vector.broadcast %c2_i32 : i32 to vector<8x1xi32>
    %13 = arith.cmpi eq, %3, %12 : vector<8x1xi32>
    %14 = arith.extui %13 : vector<8x1xi1> to vector<8x1xi32>
    %15 = arith.sitofp %14 : vector<8x1xi32> to vector<8x1xf32>
    %c3_i32 = arith.constant 3 : i32
    %16 = vector.broadcast %c3_i32 : i32 to vector<8x1xi32>
    %17 = arith.cmpi eq, %3, %16 : vector<8x1xi32>
    %18 = arith.extui %17 : vector<8x1xi1> to vector<8x1xi32>
    %19 = arith.sitofp %18 : vector<8x1xi32> to vector<8x1xf32>
    %c4_i32 = arith.constant 4 : i32
    %20 = vector.broadcast %c4_i32 : i32 to vector<8x1xi32>
    %21 = arith.cmpi eq, %3, %20 : vector<8x1xi32>
    %22 = arith.extui %21 : vector<8x1xi1> to vector<8x1xi32>
    %23 = arith.sitofp %22 : vector<8x1xi32> to vector<8x1xf32>
    %c5_i32 = arith.constant 5 : i32
    %24 = vector.broadcast %c5_i32 : i32 to vector<8x1xi32>
    %25 = arith.cmpi eq, %3, %24 : vector<8x1xi32>
    %26 = arith.extui %25 : vector<8x1xi1> to vector<8x1xi32>
    %27 = arith.sitofp %26 : vector<8x1xi32> to vector<8x1xf32>
    %c6_i32 = arith.constant 6 : i32
    %28 = vector.broadcast %c6_i32 : i32 to vector<8x1xi32>
    %29 = arith.cmpi eq, %3, %28 : vector<8x1xi32>
    %30 = arith.extui %29 : vector<8x1xi1> to vector<8x1xi32>
    %31 = arith.sitofp %30 : vector<8x1xi32> to vector<8x1xf32>
    %c7_i32 = arith.constant 7 : i32
    %32 = vector.broadcast %c7_i32 : i32 to vector<8x1xi32>
    %33 = arith.cmpi eq, %3, %32 : vector<8x1xi32>
    %34 = arith.extui %33 : vector<8x1xi1> to vector<8x1xi32>
    %35 = arith.sitofp %34 : vector<8x1xi32> to vector<8x1xf32>
    %c0_i32_3 = arith.constant 0 : i32
    %c32_i32 = arith.constant 32 : i32
    %36 = arith.muli %c0_i32_3, %c32_i32 : i32
    %37 = tpu.assume_multiple %36, 32 : i32
    %38 = arith.index_cast %37 : i32 to index
    %c0_4 = arith.constant 0 : index
    %39 = vector.load %arg1[%38, %c0_4] : memref<32x256xf32, #tpu.memory_space<vmem>>, vector<32x256xf32>
    %cst_5 = arith.constant 0.000000e+00 : f32
    %40 = vector.broadcast %cst_5 : f32 to vector<8x32xf32>
    %41 = vector.extract_strided_slice %39 {offsets = [0, 0], sizes = [4, 256], strides = [1, 1]} : vector<32x256xf32> to vector<4x256xf32>
    %42 = vector.extract_strided_slice %0 {offsets = [0, 0], sizes = [32, 1], strides = [1, 1]} : vector<32x4xf32> to vector<32x1xf32>
    %43 = vector.extract_strided_slice %41 {offsets = [0, 0], sizes = [1, 256], strides = [1, 1]} : vector<4x256xf32> to vector<1x256xf32>
    %44 = vector.broadcast %42 : vector<32x1xf32> to vector<32x256xf32>
    %45 = vector.broadcast %43 : vector<1x256xf32> to vector<32x256xf32>
    %46 = arith.mulf %44, %45 : vector<32x256xf32>
    %47 = vector.extract_strided_slice %0 {offsets = [0, 1], sizes = [32, 1], strides = [1, 1]} : vector<32x4xf32> to vector<32x1xf32>
    %48 = vector.extract_strided_slice %41 {offsets = [1, 0], sizes = [1, 256], strides = [1, 1]} : vector<4x256xf32> to vector<1x256xf32>
    %49 = vector.broadcast %47 : vector<32x1xf32> to vector<32x256xf32>
    %50 = vector.broadcast %48 : vector<1x256xf32> to vector<32x256xf32>
    %51 = arith.mulf %49, %50 : vector<32x256xf32>
    %52 = arith.addf %46, %51 : vector<32x256xf32>
    %53 = vector.extract_strided_slice %0 {offsets = [0, 2], sizes = [32, 1], strides = [1, 1]} : vector<32x4xf32> to vector<32x1xf32>
    %54 = vector.extract_strided_slice %41 {offsets = [2, 0], sizes = [1, 256], strides = [1, 1]} : vector<4x256xf32> to vector<1x256xf32>
    %55 = vector.broadcast %53 : vector<32x1xf32> to vector<32x256xf32>
    %56 = vector.broadcast %54 : vector<1x256xf32> to vector<32x256xf32>
    %57 = arith.mulf %55, %56 : vector<32x256xf32>
    %58 = arith.addf %52, %57 : vector<32x256xf32>
    %59 = vector.extract_strided_slice %0 {offsets = [0, 3], sizes = [32, 1], strides = [1, 1]} : vector<32x4xf32> to vector<32x1xf32>
    %60 = vector.extract_strided_slice %41 {offsets = [3, 0], sizes = [1, 256], strides = [1, 1]} : vector<4x256xf32> to vector<1x256xf32>
    %61 = vector.broadcast %59 : vector<32x1xf32> to vector<32x256xf32>
    %62 = vector.broadcast %60 : vector<1x256xf32> to vector<32x256xf32>
    %63 = arith.mulf %61, %62 : vector<32x256xf32>
    %64 = arith.addf %58, %63 : vector<32x256xf32>
    %65 = vector.broadcast %1 : vector<32x1xf32> to vector<32x256xf32>
    %66 = arith.addf %64, %65 : vector<32x256xf32>
    %cst_6 = arith.constant 0.000000e+00 : f32
    %67 = vector.broadcast %cst_6 : f32 to vector<32x256xf32>
    %68 = arith.maximumf %66, %67 : vector<32x256xf32>
    %cst_7 = arith.constant dense<0.000000e+00> : vector<1x32xf32>
    %69 = tpu.matmul %2, %68, %cst_7 {dimension_numbers = #tpu.dot_dimension_numbers<[1], [1], [0], [0], [0, 0, 1, 0], [], []>} : vector<1x256xf32>, vector<32x256xf32>, vector<1x32xf32> -> vector<1x32xf32>
    %cst_8 = arith.constant 3.906250e-03 : f32
    %70 = vector.broadcast %cst_8 : f32 to vector<1x32xf32>
    %71 = arith.mulf %69, %70 : vector<1x32xf32>
    %72 = vector.broadcast %7 : vector<8x1xf32> to vector<8x32xf32>
    %73 = vector.broadcast %71 : vector<1x32xf32> to vector<8x32xf32>
    %74 = arith.mulf %72, %73 : vector<8x32xf32>
    %75 = arith.addf %40, %74 : vector<8x32xf32>
    %76 = vector.extract_strided_slice %39 {offsets = [4, 0], sizes = [4, 256], strides = [1, 1]} : vector<32x256xf32> to vector<4x256xf32>
    %77 = vector.extract_strided_slice %0 {offsets = [0, 0], sizes = [32, 1], strides = [1, 1]} : vector<32x4xf32> to vector<32x1xf32>
    %78 = vector.extract_strided_slice %76 {offsets = [0, 0], sizes = [1, 256], strides = [1, 1]} : vector<4x256xf32> to vector<1x256xf32>
    %79 = vector.broadcast %77 : vector<32x1xf32> to vector<32x256xf32>
    %80 = vector.broadcast %78 : vector<1x256xf32> to vector<32x256xf32>
    %81 = arith.mulf %79, %80 : vector<32x256xf32>
    %82 = vector.extract_strided_slice %0 {offsets = [0, 1], sizes = [32, 1], strides = [1, 1]} : vector<32x4xf32> to vector<32x1xf32>
    %83 = vector.extract_strided_slice %76 {offsets = [1, 0], sizes = [1, 256], strides = [1, 1]} : vector<4x256xf32> to vector<1x256xf32>
    %84 = vector.broadcast %82 : vector<32x1xf32> to vector<32x256xf32>
    %85 = vector.broadcast %83 : vector<1x256xf32> to vector<32x256xf32>
    %86 = arith.mulf %84, %85 : vector<32x256xf32>
    %87 = arith.addf %81, %86 : vector<32x256xf32>
    %88 = vector.extract_strided_slice %0 {offsets = [0, 2], sizes = [32, 1], strides = [1, 1]} : vector<32x4xf32> to vector<32x1xf32>
    %89 = vector.extract_strided_slice %76 {offsets = [2, 0], sizes = [1, 256], strides = [1, 1]} : vector<4x256xf32> to vector<1x256xf32>
    %90 = vector.broadcast %88 : vector<32x1xf32> to vector<32x256xf32>
    %91 = vector.broadcast %89 : vector<1x256xf32> to vector<32x256xf32>
    %92 = arith.mulf %90, %91 : vector<32x256xf32>
    %93 = arith.addf %87, %92 : vector<32x256xf32>
    %94 = vector.extract_strided_slice %0 {offsets = [0, 3], sizes = [32, 1], strides = [1, 1]} : vector<32x4xf32> to vector<32x1xf32>
    %95 = vector.extract_strided_slice %76 {offsets = [3, 0], sizes = [1, 256], strides = [1, 1]} : vector<4x256xf32> to vector<1x256xf32>
    %96 = vector.broadcast %94 : vector<32x1xf32> to vector<32x256xf32>
    %97 = vector.broadcast %95 : vector<1x256xf32> to vector<32x256xf32>
    %98 = arith.mulf %96, %97 : vector<32x256xf32>
    %99 = arith.addf %93, %98 : vector<32x256xf32>
    %100 = vector.broadcast %1 : vector<32x1xf32> to vector<32x256xf32>
    %101 = arith.addf %99, %100 : vector<32x256xf32>
    %cst_9 = arith.constant 0.000000e+00 : f32
    %102 = vector.broadcast %cst_9 : f32 to vector<32x256xf32>
    %103 = arith.maximumf %101, %102 : vector<32x256xf32>
    %cst_10 = arith.constant dense<0.000000e+00> : vector<1x32xf32>
    %104 = tpu.matmul %2, %103, %cst_10 {dimension_numbers = #tpu.dot_dimension_numbers<[1], [1], [0], [0], [0, 0, 1, 0], [], []>} : vector<1x256xf32>, vector<32x256xf32>, vector<1x32xf32> -> vector<1x32xf32>
    %cst_11 = arith.constant 3.906250e-03 : f32
    %105 = vector.broadcast %cst_11 : f32 to vector<1x32xf32>
    %106 = arith.mulf %104, %105 : vector<1x32xf32>
    %107 = vector.broadcast %11 : vector<8x1xf32> to vector<8x32xf32>
    %108 = vector.broadcast %106 : vector<1x32xf32> to vector<8x32xf32>
    %109 = arith.mulf %107, %108 : vector<8x32xf32>
    %110 = arith.addf %75, %109 : vector<8x32xf32>
    %111 = vector.extract_strided_slice %39 {offsets = [8, 0], sizes = [4, 256], strides = [1, 1]} : vector<32x256xf32> to vector<4x256xf32>
    %112 = vector.extract_strided_slice %0 {offsets = [0, 0], sizes = [32, 1], strides = [1, 1]} : vector<32x4xf32> to vector<32x1xf32>
    %113 = vector.extract_strided_slice %111 {offsets = [0, 0], sizes = [1, 256], strides = [1, 1]} : vector<4x256xf32> to vector<1x256xf32>
    %114 = vector.broadcast %112 : vector<32x1xf32> to vector<32x256xf32>
    %115 = vector.broadcast %113 : vector<1x256xf32> to vector<32x256xf32>
    %116 = arith.mulf %114, %115 : vector<32x256xf32>
    %117 = vector.extract_strided_slice %0 {offsets = [0, 1], sizes = [32, 1], strides = [1, 1]} : vector<32x4xf32> to vector<32x1xf32>
    %118 = vector.extract_strided_slice %111 {offsets = [1, 0], sizes = [1, 256], strides = [1, 1]} : vector<4x256xf32> to vector<1x256xf32>
    %119 = vector.broadcast %117 : vector<32x1xf32> to vector<32x256xf32>
    %120 = vector.broadcast %118 : vector<1x256xf32> to vector<32x256xf32>
    %121 = arith.mulf %119, %120 : vector<32x256xf32>
    %122 = arith.addf %116, %121 : vector<32x256xf32>
    %123 = vector.extract_strided_slice %0 {offsets = [0, 2], sizes = [32, 1], strides = [1, 1]} : vector<32x4xf32> to vector<32x1xf32>
    %124 = vector.extract_strided_slice %111 {offsets = [2, 0], sizes = [1, 256], strides = [1, 1]} : vector<4x256xf32> to vector<1x256xf32>
    %125 = vector.broadcast %123 : vector<32x1xf32> to vector<32x256xf32>
    %126 = vector.broadcast %124 : vector<1x256xf32> to vector<32x256xf32>
    %127 = arith.mulf %125, %126 : vector<32x256xf32>
    %128 = arith.addf %122, %127 : vector<32x256xf32>
    %129 = vector.extract_strided_slice %0 {offsets = [0, 3], sizes = [32, 1], strides = [1, 1]} : vector<32x4xf32> to vector<32x1xf32>
    %130 = vector.extract_strided_slice %111 {offsets = [3, 0], sizes = [1, 256], strides = [1, 1]} : vector<4x256xf32> to vector<1x256xf32>
    %131 = vector.broadcast %129 : vector<32x1xf32> to vector<32x256xf32>
    %132 = vector.broadcast %130 : vector<1x256xf32> to vector<32x256xf32>
    %133 = arith.mulf %131, %132 : vector<32x256xf32>
    %134 = arith.addf %128, %133 : vector<32x256xf32>
    %135 = vector.broadcast %1 : vector<32x1xf32> to vector<32x256xf32>
    %136 = arith.addf %134, %135 : vector<32x256xf32>
    %cst_12 = arith.constant 0.000000e+00 : f32
    %137 = vector.broadcast %cst_12 : f32 to vector<32x256xf32>
    %138 = arith.maximumf %136, %137 : vector<32x256xf32>
    %cst_13 = arith.constant dense<0.000000e+00> : vector<1x32xf32>
    %139 = tpu.matmul %2, %138, %cst_13 {dimension_numbers = #tpu.dot_dimension_numbers<[1], [1], [0], [0], [0, 0, 1, 0], [], []>} : vector<1x256xf32>, vector<32x256xf32>, vector<1x32xf32> -> vector<1x32xf32>
    %cst_14 = arith.constant 3.906250e-03 : f32
    %140 = vector.broadcast %cst_14 : f32 to vector<1x32xf32>
    %141 = arith.mulf %139, %140 : vector<1x32xf32>
    %142 = vector.broadcast %15 : vector<8x1xf32> to vector<8x32xf32>
    %143 = vector.broadcast %141 : vector<1x32xf32> to vector<8x32xf32>
    %144 = arith.mulf %142, %143 : vector<8x32xf32>
    %145 = arith.addf %110, %144 : vector<8x32xf32>
    %146 = vector.extract_strided_slice %39 {offsets = [12, 0], sizes = [4, 256], strides = [1, 1]} : vector<32x256xf32> to vector<4x256xf32>
    %147 = vector.extract_strided_slice %0 {offsets = [0, 0], sizes = [32, 1], strides = [1, 1]} : vector<32x4xf32> to vector<32x1xf32>
    %148 = vector.extract_strided_slice %146 {offsets = [0, 0], sizes = [1, 256], strides = [1, 1]} : vector<4x256xf32> to vector<1x256xf32>
    %149 = vector.broadcast %147 : vector<32x1xf32> to vector<32x256xf32>
    %150 = vector.broadcast %148 : vector<1x256xf32> to vector<32x256xf32>
    %151 = arith.mulf %149, %150 : vector<32x256xf32>
    %152 = vector.extract_strided_slice %0 {offsets = [0, 1], sizes = [32, 1], strides = [1, 1]} : vector<32x4xf32> to vector<32x1xf32>
    %153 = vector.extract_strided_slice %146 {offsets = [1, 0], sizes = [1, 256], strides = [1, 1]} : vector<4x256xf32> to vector<1x256xf32>
    %154 = vector.broadcast %152 : vector<32x1xf32> to vector<32x256xf32>
    %155 = vector.broadcast %153 : vector<1x256xf32> to vector<32x256xf32>
    %156 = arith.mulf %154, %155 : vector<32x256xf32>
    %157 = arith.addf %151, %156 : vector<32x256xf32>
    %158 = vector.extract_strided_slice %0 {offsets = [0, 2], sizes = [32, 1], strides = [1, 1]} : vector<32x4xf32> to vector<32x1xf32>
    %159 = vector.extract_strided_slice %146 {offsets = [2, 0], sizes = [1, 256], strides = [1, 1]} : vector<4x256xf32> to vector<1x256xf32>
    %160 = vector.broadcast %158 : vector<32x1xf32> to vector<32x256xf32>
    %161 = vector.broadcast %159 : vector<1x256xf32> to vector<32x256xf32>
    %162 = arith.mulf %160, %161 : vector<32x256xf32>
    %163 = arith.addf %157, %162 : vector<32x256xf32>
    %164 = vector.extract_strided_slice %0 {offsets = [0, 3], sizes = [32, 1], strides = [1, 1]} : vector<32x4xf32> to vector<32x1xf32>
    %165 = vector.extract_strided_slice %146 {offsets = [3, 0], sizes = [1, 256], strides = [1, 1]} : vector<4x256xf32> to vector<1x256xf32>
    %166 = vector.broadcast %164 : vector<32x1xf32> to vector<32x256xf32>
    %167 = vector.broadcast %165 : vector<1x256xf32> to vector<32x256xf32>
    %168 = arith.mulf %166, %167 : vector<32x256xf32>
    %169 = arith.addf %163, %168 : vector<32x256xf32>
    %170 = vector.broadcast %1 : vector<32x1xf32> to vector<32x256xf32>
    %171 = arith.addf %169, %170 : vector<32x256xf32>
    %cst_15 = arith.constant 0.000000e+00 : f32
    %172 = vector.broadcast %cst_15 : f32 to vector<32x256xf32>
    %173 = arith.maximumf %171, %172 : vector<32x256xf32>
    %cst_16 = arith.constant dense<0.000000e+00> : vector<1x32xf32>
    %174 = tpu.matmul %2, %173, %cst_16 {dimension_numbers = #tpu.dot_dimension_numbers<[1], [1], [0], [0], [0, 0, 1, 0], [], []>} : vector<1x256xf32>, vector<32x256xf32>, vector<1x32xf32> -> vector<1x32xf32>
    %cst_17 = arith.constant 3.906250e-03 : f32
    %175 = vector.broadcast %cst_17 : f32 to vector<1x32xf32>
    %176 = arith.mulf %174, %175 : vector<1x32xf32>
    %177 = vector.broadcast %19 : vector<8x1xf32> to vector<8x32xf32>
    %178 = vector.broadcast %176 : vector<1x32xf32> to vector<8x32xf32>
    %179 = arith.mulf %177, %178 : vector<8x32xf32>
    %180 = arith.addf %145, %179 : vector<8x32xf32>
    %181 = vector.extract_strided_slice %39 {offsets = [16, 0], sizes = [4, 256], strides = [1, 1]} : vector<32x256xf32> to vector<4x256xf32>
    %182 = vector.extract_strided_slice %0 {offsets = [0, 0], sizes = [32, 1], strides = [1, 1]} : vector<32x4xf32> to vector<32x1xf32>
    %183 = vector.extract_strided_slice %181 {offsets = [0, 0], sizes = [1, 256], strides = [1, 1]} : vector<4x256xf32> to vector<1x256xf32>
    %184 = vector.broadcast %182 : vector<32x1xf32> to vector<32x256xf32>
    %185 = vector.broadcast %183 : vector<1x256xf32> to vector<32x256xf32>
    %186 = arith.mulf %184, %185 : vector<32x256xf32>
    %187 = vector.extract_strided_slice %0 {offsets = [0, 1], sizes = [32, 1], strides = [1, 1]} : vector<32x4xf32> to vector<32x1xf32>
    %188 = vector.extract_strided_slice %181 {offsets = [1, 0], sizes = [1, 256], strides = [1, 1]} : vector<4x256xf32> to vector<1x256xf32>
    %189 = vector.broadcast %187 : vector<32x1xf32> to vector<32x256xf32>
    %190 = vector.broadcast %188 : vector<1x256xf32> to vector<32x256xf32>
    %191 = arith.mulf %189, %190 : vector<32x256xf32>
    %192 = arith.addf %186, %191 : vector<32x256xf32>
    %193 = vector.extract_strided_slice %0 {offsets = [0, 2], sizes = [32, 1], strides = [1, 1]} : vector<32x4xf32> to vector<32x1xf32>
    %194 = vector.extract_strided_slice %181 {offsets = [2, 0], sizes = [1, 256], strides = [1, 1]} : vector<4x256xf32> to vector<1x256xf32>
    %195 = vector.broadcast %193 : vector<32x1xf32> to vector<32x256xf32>
    %196 = vector.broadcast %194 : vector<1x256xf32> to vector<32x256xf32>
    %197 = arith.mulf %195, %196 : vector<32x256xf32>
    %198 = arith.addf %192, %197 : vector<32x256xf32>
    %199 = vector.extract_strided_slice %0 {offsets = [0, 3], sizes = [32, 1], strides = [1, 1]} : vector<32x4xf32> to vector<32x1xf32>
    %200 = vector.extract_strided_slice %181 {offsets = [3, 0], sizes = [1, 256], strides = [1, 1]} : vector<4x256xf32> to vector<1x256xf32>
    %201 = vector.broadcast %199 : vector<32x1xf32> to vector<32x256xf32>
    %202 = vector.broadcast %200 : vector<1x256xf32> to vector<32x256xf32>
    %203 = arith.mulf %201, %202 : vector<32x256xf32>
    %204 = arith.addf %198, %203 : vector<32x256xf32>
    %205 = vector.broadcast %1 : vector<32x1xf32> to vector<32x256xf32>
    %206 = arith.addf %204, %205 : vector<32x256xf32>
    %cst_18 = arith.constant 0.000000e+00 : f32
    %207 = vector.broadcast %cst_18 : f32 to vector<32x256xf32>
    %208 = arith.maximumf %206, %207 : vector<32x256xf32>
    %cst_19 = arith.constant dense<0.000000e+00> : vector<1x32xf32>
    %209 = tpu.matmul %2, %208, %cst_19 {dimension_numbers = #tpu.dot_dimension_numbers<[1], [1], [0], [0], [0, 0, 1, 0], [], []>} : vector<1x256xf32>, vector<32x256xf32>, vector<1x32xf32> -> vector<1x32xf32>
    %cst_20 = arith.constant 3.906250e-03 : f32
    %210 = vector.broadcast %cst_20 : f32 to vector<1x32xf32>
    %211 = arith.mulf %209, %210 : vector<1x32xf32>
    %212 = vector.broadcast %23 : vector<8x1xf32> to vector<8x32xf32>
    %213 = vector.broadcast %211 : vector<1x32xf32> to vector<8x32xf32>
    %214 = arith.mulf %212, %213 : vector<8x32xf32>
    %215 = arith.addf %180, %214 : vector<8x32xf32>
    %216 = vector.extract_strided_slice %39 {offsets = [20, 0], sizes = [4, 256], strides = [1, 1]} : vector<32x256xf32> to vector<4x256xf32>
    %217 = vector.extract_strided_slice %0 {offsets = [0, 0], sizes = [32, 1], strides = [1, 1]} : vector<32x4xf32> to vector<32x1xf32>
    %218 = vector.extract_strided_slice %216 {offsets = [0, 0], sizes = [1, 256], strides = [1, 1]} : vector<4x256xf32> to vector<1x256xf32>
    %219 = vector.broadcast %217 : vector<32x1xf32> to vector<32x256xf32>
    %220 = vector.broadcast %218 : vector<1x256xf32> to vector<32x256xf32>
    %221 = arith.mulf %219, %220 : vector<32x256xf32>
    %222 = vector.extract_strided_slice %0 {offsets = [0, 1], sizes = [32, 1], strides = [1, 1]} : vector<32x4xf32> to vector<32x1xf32>
    %223 = vector.extract_strided_slice %216 {offsets = [1, 0], sizes = [1, 256], strides = [1, 1]} : vector<4x256xf32> to vector<1x256xf32>
    %224 = vector.broadcast %222 : vector<32x1xf32> to vector<32x256xf32>
    %225 = vector.broadcast %223 : vector<1x256xf32> to vector<32x256xf32>
    %226 = arith.mulf %224, %225 : vector<32x256xf32>
    %227 = arith.addf %221, %226 : vector<32x256xf32>
    %228 = vector.extract_strided_slice %0 {offsets = [0, 2], sizes = [32, 1], strides = [1, 1]} : vector<32x4xf32> to vector<32x1xf32>
    %229 = vector.extract_strided_slice %216 {offsets = [2, 0], sizes = [1, 256], strides = [1, 1]} : vector<4x256xf32> to vector<1x256xf32>
    %230 = vector.broadcast %228 : vector<32x1xf32> to vector<32x256xf32>
    %231 = vector.broadcast %229 : vector<1x256xf32> to vector<32x256xf32>
    %232 = arith.mulf %230, %231 : vector<32x256xf32>
    %233 = arith.addf %227, %232 : vector<32x256xf32>
    %234 = vector.extract_strided_slice %0 {offsets = [0, 3], sizes = [32, 1], strides = [1, 1]} : vector<32x4xf32> to vector<32x1xf32>
    %235 = vector.extract_strided_slice %216 {offsets = [3, 0], sizes = [1, 256], strides = [1, 1]} : vector<4x256xf32> to vector<1x256xf32>
    %236 = vector.broadcast %234 : vector<32x1xf32> to vector<32x256xf32>
    %237 = vector.broadcast %235 : vector<1x256xf32> to vector<32x256xf32>
    %238 = arith.mulf %236, %237 : vector<32x256xf32>
    %239 = arith.addf %233, %238 : vector<32x256xf32>
    %240 = vector.broadcast %1 : vector<32x1xf32> to vector<32x256xf32>
    %241 = arith.addf %239, %240 : vector<32x256xf32>
    %cst_21 = arith.constant 0.000000e+00 : f32
    %242 = vector.broadcast %cst_21 : f32 to vector<32x256xf32>
    %243 = arith.maximumf %241, %242 : vector<32x256xf32>
    %cst_22 = arith.constant dense<0.000000e+00> : vector<1x32xf32>
    %244 = tpu.matmul %2, %243, %cst_22 {dimension_numbers = #tpu.dot_dimension_numbers<[1], [1], [0], [0], [0, 0, 1, 0], [], []>} : vector<1x256xf32>, vector<32x256xf32>, vector<1x32xf32> -> vector<1x32xf32>
    %cst_23 = arith.constant 3.906250e-03 : f32
    %245 = vector.broadcast %cst_23 : f32 to vector<1x32xf32>
    %246 = arith.mulf %244, %245 : vector<1x32xf32>
    %247 = vector.broadcast %27 : vector<8x1xf32> to vector<8x32xf32>
    %248 = vector.broadcast %246 : vector<1x32xf32> to vector<8x32xf32>
    %249 = arith.mulf %247, %248 : vector<8x32xf32>
    %250 = arith.addf %215, %249 : vector<8x32xf32>
    %251 = vector.extract_strided_slice %39 {offsets = [24, 0], sizes = [4, 256], strides = [1, 1]} : vector<32x256xf32> to vector<4x256xf32>
    %252 = vector.extract_strided_slice %0 {offsets = [0, 0], sizes = [32, 1], strides = [1, 1]} : vector<32x4xf32> to vector<32x1xf32>
    %253 = vector.extract_strided_slice %251 {offsets = [0, 0], sizes = [1, 256], strides = [1, 1]} : vector<4x256xf32> to vector<1x256xf32>
    %254 = vector.broadcast %252 : vector<32x1xf32> to vector<32x256xf32>
    %255 = vector.broadcast %253 : vector<1x256xf32> to vector<32x256xf32>
    %256 = arith.mulf %254, %255 : vector<32x256xf32>
    %257 = vector.extract_strided_slice %0 {offsets = [0, 1], sizes = [32, 1], strides = [1, 1]} : vector<32x4xf32> to vector<32x1xf32>
    %258 = vector.extract_strided_slice %251 {offsets = [1, 0], sizes = [1, 256], strides = [1, 1]} : vector<4x256xf32> to vector<1x256xf32>
    %259 = vector.broadcast %257 : vector<32x1xf32> to vector<32x256xf32>
    %260 = vector.broadcast %258 : vector<1x256xf32> to vector<32x256xf32>
    %261 = arith.mulf %259, %260 : vector<32x256xf32>
    %262 = arith.addf %256, %261 : vector<32x256xf32>
    %263 = vector.extract_strided_slice %0 {offsets = [0, 2], sizes = [32, 1], strides = [1, 1]} : vector<32x4xf32> to vector<32x1xf32>
    %264 = vector.extract_strided_slice %251 {offsets = [2, 0], sizes = [1, 256], strides = [1, 1]} : vector<4x256xf32> to vector<1x256xf32>
    %265 = vector.broadcast %263 : vector<32x1xf32> to vector<32x256xf32>
    %266 = vector.broadcast %264 : vector<1x256xf32> to vector<32x256xf32>
    %267 = arith.mulf %265, %266 : vector<32x256xf32>
    %268 = arith.addf %262, %267 : vector<32x256xf32>
    %269 = vector.extract_strided_slice %0 {offsets = [0, 3], sizes = [32, 1], strides = [1, 1]} : vector<32x4xf32> to vector<32x1xf32>
    %270 = vector.extract_strided_slice %251 {offsets = [3, 0], sizes = [1, 256], strides = [1, 1]} : vector<4x256xf32> to vector<1x256xf32>
    %271 = vector.broadcast %269 : vector<32x1xf32> to vector<32x256xf32>
    %272 = vector.broadcast %270 : vector<1x256xf32> to vector<32x256xf32>
    %273 = arith.mulf %271, %272 : vector<32x256xf32>
    %274 = arith.addf %268, %273 : vector<32x256xf32>
    %275 = vector.broadcast %1 : vector<32x1xf32> to vector<32x256xf32>
    %276 = arith.addf %274, %275 : vector<32x256xf32>
    %cst_24 = arith.constant 0.000000e+00 : f32
    %277 = vector.broadcast %cst_24 : f32 to vector<32x256xf32>
    %278 = arith.maximumf %276, %277 : vector<32x256xf32>
    %cst_25 = arith.constant dense<0.000000e+00> : vector<1x32xf32>
    %279 = tpu.matmul %2, %278, %cst_25 {dimension_numbers = #tpu.dot_dimension_numbers<[1], [1], [0], [0], [0, 0, 1, 0], [], []>} : vector<1x256xf32>, vector<32x256xf32>, vector<1x32xf32> -> vector<1x32xf32>
    %cst_26 = arith.constant 3.906250e-03 : f32
    %280 = vector.broadcast %cst_26 : f32 to vector<1x32xf32>
    %281 = arith.mulf %279, %280 : vector<1x32xf32>
    %282 = vector.broadcast %31 : vector<8x1xf32> to vector<8x32xf32>
    %283 = vector.broadcast %281 : vector<1x32xf32> to vector<8x32xf32>
    %284 = arith.mulf %282, %283 : vector<8x32xf32>
    %285 = arith.addf %250, %284 : vector<8x32xf32>
    %286 = vector.extract_strided_slice %39 {offsets = [28, 0], sizes = [4, 256], strides = [1, 1]} : vector<32x256xf32> to vector<4x256xf32>
    %287 = vector.extract_strided_slice %0 {offsets = [0, 0], sizes = [32, 1], strides = [1, 1]} : vector<32x4xf32> to vector<32x1xf32>
    %288 = vector.extract_strided_slice %286 {offsets = [0, 0], sizes = [1, 256], strides = [1, 1]} : vector<4x256xf32> to vector<1x256xf32>
    %289 = vector.broadcast %287 : vector<32x1xf32> to vector<32x256xf32>
    %290 = vector.broadcast %288 : vector<1x256xf32> to vector<32x256xf32>
    %291 = arith.mulf %289, %290 : vector<32x256xf32>
    %292 = vector.extract_strided_slice %0 {offsets = [0, 1], sizes = [32, 1], strides = [1, 1]} : vector<32x4xf32> to vector<32x1xf32>
    %293 = vector.extract_strided_slice %286 {offsets = [1, 0], sizes = [1, 256], strides = [1, 1]} : vector<4x256xf32> to vector<1x256xf32>
    %294 = vector.broadcast %292 : vector<32x1xf32> to vector<32x256xf32>
    %295 = vector.broadcast %293 : vector<1x256xf32> to vector<32x256xf32>
    %296 = arith.mulf %294, %295 : vector<32x256xf32>
    %297 = arith.addf %291, %296 : vector<32x256xf32>
    %298 = vector.extract_strided_slice %0 {offsets = [0, 2], sizes = [32, 1], strides = [1, 1]} : vector<32x4xf32> to vector<32x1xf32>
    %299 = vector.extract_strided_slice %286 {offsets = [2, 0], sizes = [1, 256], strides = [1, 1]} : vector<4x256xf32> to vector<1x256xf32>
    %300 = vector.broadcast %298 : vector<32x1xf32> to vector<32x256xf32>
    %301 = vector.broadcast %299 : vector<1x256xf32> to vector<32x256xf32>
    %302 = arith.mulf %300, %301 : vector<32x256xf32>
    %303 = arith.addf %297, %302 : vector<32x256xf32>
    %304 = vector.extract_strided_slice %0 {offsets = [0, 3], sizes = [32, 1], strides = [1, 1]} : vector<32x4xf32> to vector<32x1xf32>
    %305 = vector.extract_strided_slice %286 {offsets = [3, 0], sizes = [1, 256], strides = [1, 1]} : vector<4x256xf32> to vector<1x256xf32>
    %306 = vector.broadcast %304 : vector<32x1xf32> to vector<32x256xf32>
    %307 = vector.broadcast %305 : vector<1x256xf32> to vector<32x256xf32>
    %308 = arith.mulf %306, %307 : vector<32x256xf32>
    %309 = arith.addf %303, %308 : vector<32x256xf32>
    %310 = vector.broadcast %1 : vector<32x1xf32> to vector<32x256xf32>
    %311 = arith.addf %309, %310 : vector<32x256xf32>
    %cst_27 = arith.constant 0.000000e+00 : f32
    %312 = vector.broadcast %cst_27 : f32 to vector<32x256xf32>
    %313 = arith.maximumf %311, %312 : vector<32x256xf32>
    %cst_28 = arith.constant dense<0.000000e+00> : vector<1x32xf32>
    %314 = tpu.matmul %2, %313, %cst_28 {dimension_numbers = #tpu.dot_dimension_numbers<[1], [1], [0], [0], [0, 0, 1, 0], [], []>} : vector<1x256xf32>, vector<32x256xf32>, vector<1x32xf32> -> vector<1x32xf32>
    %cst_29 = arith.constant 3.906250e-03 : f32
    %315 = vector.broadcast %cst_29 : f32 to vector<1x32xf32>
    %316 = arith.mulf %314, %315 : vector<1x32xf32>
    %317 = vector.broadcast %35 : vector<8x1xf32> to vector<8x32xf32>
    %318 = vector.broadcast %316 : vector<1x32xf32> to vector<8x32xf32>
    %319 = arith.mulf %317, %318 : vector<8x32xf32>
    %320 = arith.addf %285, %319 : vector<8x32xf32>
    %c8_i32 = arith.constant 8 : i32
    %321 = arith.muli %c0_i32_3, %c8_i32 : i32
    %322 = tpu.assume_multiple %321, 8 : i32
    %323 = arith.index_cast %322 : i32 to index
    %c0_30 = arith.constant 0 : index
    %324 = vector.load %arg13[%323, %c0_30] : memref<8x32xf32, #tpu.memory_space<vmem>>, vector<8x32xf32>
    tpu.vector_store %arg13[%323, %c0_30], %320 {strides = array<i32>} : memref<8x32xf32, #tpu.memory_space<vmem>>, vector<8x32xf32>,
    %c1_i32_31 = arith.constant 1 : i32
    %c0_32 = arith.constant 0 : index
    %c0_33 = arith.constant 0 : index
    %325 = vector.load %arg13[%c0_32, %c0_33] : memref<8x32xf32, #tpu.memory_space<vmem>>, vector<8x32xf32>
    %c0_34 = arith.constant 0 : index
    %c0_35 = arith.constant 0 : index
    %326 = vector.load %arg4[%c0_34, %c0_35] : memref<128x32xf32, #tpu.memory_space<vmem>>, vector<128x32xf32>
    %cst_36 = arith.constant dense<0.000000e+00> : vector<128x8xf32>
    %327 = tpu.matmul %326, %325, %cst_36 {dimension_numbers = #tpu.dot_dimension_numbers<[1], [1], [0], [0], [0, 0, 1, 0], [], []>} : vector<128x32xf32>, vector<8x32xf32>, vector<128x8xf32> -> vector<128x8xf32>
    %c0_37 = arith.constant 0 : index
    %c0_38 = arith.constant 0 : index
    %328 = vector.load %arg5[%c0_37, %c0_38] : memref<128x1xf32, #tpu.memory_space<vmem>>, vector<128x1xf32>
    %329 = vector.broadcast %328 : vector<128x1xf32> to vector<128x8xf32>
    %330 = arith.addf %327, %329 : vector<128x8xf32>
    %cst_39 = arith.constant 0.000000e+00 : f32
    %331 = vector.broadcast %cst_39 : f32 to vector<128x8xf32>
    %332 = arith.maximumf %330, %331 : vector<128x8xf32>
    %c0_40 = arith.constant 0 : index
    %c0_41 = arith.constant 0 : index
    %333 = vector.load %arg6[%c0_40, %c0_41] : memref<64x128xf32, #tpu.memory_space<vmem>>, vector<64x128xf32>
    %cst_42 = arith.constant dense<0.000000e+00> : vector<64x8xf32>
    %334 = tpu.matmul %333, %332, %cst_42 {dimension_numbers = #tpu.dot_dimension_numbers<[1], [0], [0], [1], [0, 0, 1, 1], [], []>} : vector<64x128xf32>, vector<128x8xf32>, vector<64x8xf32> -> vector<64x8xf32>
    %c0_43 = arith.constant 0 : index
    %c0_44 = arith.constant 0 : index
    %335 = vector.load %arg7[%c0_43, %c0_44] : memref<64x1xf32, #tpu.memory_space<vmem>>, vector<64x1xf32>
    %336 = vector.broadcast %335 : vector<64x1xf32> to vector<64x8xf32>
    %337 = arith.addf %334, %336 : vector<64x8xf32>
    %cst_45 = arith.constant 0.000000e+00 : f32
    %338 = vector.broadcast %cst_45 : f32 to vector<64x8xf32>
    %339 = arith.maximumf %337, %338 : vector<64x8xf32>
    %c0_46 = arith.constant 0 : index
    %c0_47 = arith.constant 0 : index
    %340 = vector.load %arg8[%c0_46, %c0_47] : memref<32x64xf32, #tpu.memory_space<vmem>>, vector<32x64xf32>
    %cst_48 = arith.constant dense<0.000000e+00> : vector<32x8xf32>
    %341 = tpu.matmul %340, %339, %cst_48 {dimension_numbers = #tpu.dot_dimension_numbers<[1], [0], [0], [1], [0, 0, 1, 1], [], []>} : vector<32x64xf32>, vector<64x8xf32>, vector<32x8xf32> -> vector<32x8xf32>
    %c0_49 = arith.constant 0 : index
    %c0_50 = arith.constant 0 : index
    %342 = vector.load %arg9[%c0_49, %c0_50] : memref<32x1xf32, #tpu.memory_space<vmem>>, vector<32x1xf32>
    %343 = vector.broadcast %342 : vector<32x1xf32> to vector<32x8xf32>
    %344 = arith.addf %341, %343 : vector<32x8xf32>
    %cst_51 = arith.constant 0.000000e+00 : f32
    %345 = vector.broadcast %cst_51 : f32 to vector<32x8xf32>
    %346 = arith.maximumf %344, %345 : vector<32x8xf32>
    %c0_52 = arith.constant 0 : index
    %c0_53 = arith.constant 0 : index
    %347 = vector.load %arg10[%c0_52, %c0_53] : memref<1x32xf32, #tpu.memory_space<vmem>>, vector<1x32xf32>
    %cst_54 = arith.constant dense<0.000000e+00> : vector<1x8xf32>
    %348 = tpu.matmul %347, %346, %cst_54 {dimension_numbers = #tpu.dot_dimension_numbers<[1], [0], [0], [1], [0, 0, 1, 1], [], []>} : vector<1x32xf32>, vector<32x8xf32>, vector<1x8xf32> -> vector<1x8xf32>
    %c0_55 = arith.constant 0 : index
    %c0_56 = arith.constant 0 : index
    %349 = vector.load %arg11[%c0_55, %c0_56] : memref<1x1xf32, #tpu.memory_space<vmem>>, vector<1x1xf32>
    %350 = vector.broadcast %349 : vector<1x1xf32> to vector<1x8xf32>
    %351 = arith.addf %348, %350 : vector<1x8xf32>
    %c0_57 = arith.constant 0 : index
    %c0_58 = arith.constant 0 : index
    %c0_59 = arith.constant 0 : index
    %352 = vector.load %arg12[%c0_57, %c0_58, %c0_59] : memref<1x1x8xf32, #tpu.memory_space<vmem>>, vector<1x1x8xf32>
    %353 = vector.shape_cast %352 : vector<1x1x8xf32> to vector<1x8xf32>
    %354 = vector.shape_cast %351 : vector<1x8xf32> to vector<1x1x8xf32>
    tpu.vector_store %arg12[%c0_57, %c0_58, %c0_59], %354 {strides = array<i32>} : memref<1x1x8xf32, #tpu.memory_space<vmem>>, vector<1x1x8xf32>,
    return
  }
  func.func @transform_0(%arg0: i32) -> (i32, i32) {
    %c0_i32 = arith.constant 0 : i32
    %c0_i32_0 = arith.constant 0 : i32
    return %arg0, %c0_i32 : i32, i32
  }
  func.func @transform_1(%arg0: i32) -> (i32, i32) {
    %c0_i32 = arith.constant 0 : i32
    %c0_i32_0 = arith.constant 0 : i32
    %c0_i32_1 = arith.constant 0 : i32
    return %c0_i32, %c0_i32_0 : i32, i32
  }
  func.func @transform_2(%arg0: i32) -> (i32, i32) {
    %c0_i32 = arith.constant 0 : i32
    %c0_i32_0 = arith.constant 0 : i32
    %c0_i32_1 = arith.constant 0 : i32
    return %c0_i32, %c0_i32_0 : i32, i32
  }
  func.func @transform_3(%arg0: i32) -> (i32, i32) {
    %c0_i32 = arith.constant 0 : i32
    %c0_i32_0 = arith.constant 0 : i32
    %c0_i32_1 = arith.constant 0 : i32
    return %c0_i32, %c0_i32_0 : i32, i32
  }
  func.func @transform_4(%arg0: i32) -> (i32, i32) {
    %c0_i32 = arith.constant 0 : i32
    %c0_i32_0 = arith.constant 0 : i32
    %c0_i32_1 = arith.constant 0 : i32
    return %c0_i32, %c0_i32_0 : i32, i32
  }
  func.func @transform_5(%arg0: i32) -> (i32, i32) {
    %c0_i32 = arith.constant 0 : i32
    %c0_i32_0 = arith.constant 0 : i32
    %c0_i32_1 = arith.constant 0 : i32
    return %c0_i32, %c0_i32_0 : i32, i32
  }
  func.func @transform_6(%arg0: i32) -> (i32, i32) {
    %c0_i32 = arith.constant 0 : i32
    %c0_i32_0 = arith.constant 0 : i32
    %c0_i32_1 = arith.constant 0 : i32
    return %c0_i32, %c0_i32_0 : i32, i32
  }
  func.func @transform_7(%arg0: i32) -> (i32, i32) {
    %c0_i32 = arith.constant 0 : i32
    %c0_i32_0 = arith.constant 0 : i32
    %c0_i32_1 = arith.constant 0 : i32
    return %c0_i32, %c0_i32_0 : i32, i32
  }
  func.func @transform_8(%arg0: i32) -> (i32, i32) {
    %c0_i32 = arith.constant 0 : i32
    %c0_i32_0 = arith.constant 0 : i32
    %c0_i32_1 = arith.constant 0 : i32
    return %c0_i32, %c0_i32_0 : i32, i32
  }
  func.func @transform_9(%arg0: i32) -> (i32, i32) {
    %c0_i32 = arith.constant 0 : i32
    %c0_i32_0 = arith.constant 0 : i32
    %c0_i32_1 = arith.constant 0 : i32
    return %c0_i32, %c0_i32_0 : i32, i32
  }
  func.func @transform_10(%arg0: i32) -> (i32, i32) {
    %c0_i32 = arith.constant 0 : i32
    %c0_i32_0 = arith.constant 0 : i32
    %c0_i32_1 = arith.constant 0 : i32
    return %c0_i32, %c0_i32_0 : i32, i32
  }
  func.func @transform_11(%arg0: i32) -> (i32, i32, i32) {
    %c0_i32 = arith.constant 0 : i32
    %c0_i32_0 = arith.constant 0 : i32
    %c0_i32_1 = arith.constant 0 : i32
    return %arg0, %c0_i32, %c0_i32_0 : i32, i32, i32
  }
}

</mosaic_0001>

<bundles_post_ra>
// kernel: tpu_custom_call.1
= control target key start
LH: loop header
LB: loop body
LE: loop exit
PB: predicated region body
PF: predicated region fallthrough
CT: control target
= control target key end

     0   :  { %s3915_s0 = inlined_call_operand.vmem [shape: f32[32,256], index: 0, kind: input, shape index: {}]   ;;  %s3916_s1 = inlined_call_operand.vmem [shape: f32[32,4], index: 1, kind: input, shape index: {}]   ;;  %s3917_s2 = inlined_call_operand.vmem [shape: f32[32,1], index: 2, kind: input, shape index: {}]   ;;  %s3918_s3 = inlined_call_operand.vmem [shape: f32[128,32], index: 3, kind: input, shape index: {}]   ;;  %s3919_s4 = inlined_call_operand.vmem [shape: f32[128,1], index: 4, kind: input, shape index: {}]   ;;  %s3920_s5 = inlined_call_operand.vmem [shape: f32[64,128], index: 5, kind: input, shape index: {}]   ;;  %s3921_s6 = inlined_call_operand.vmem [shape: f32[64,1], index: 6, kind: input, shape index: {}]   ;;  %s3922_s7 = inlined_call_operand.vmem [shape: f32[32,64], index: 7, kind: input, shape index: {}]   ;;  %s3923_s8 = inlined_call_operand.vmem [shape: f32[32,1], index: 8, kind: input, shape index: {}]   ;;  %s3924_s9 = inlined_call_operand.vmem [shape: f32[1,32], index: 9, kind: input, shape index: {}]   ;;  %s3925_s10 = inlined_call_operand.<no memory space> [shape: f32[1,1], index: 10, kind: input, shape index: {}]   ;;  %s3926_s11 = inlined_call_operand.hbm [shape: f32[1,1,8], index: 11, kind: output, shape index: {}]  }
   0x1   :  { %v16_v0 = vstv %s3925_s10 }
   0x2   :  { %17 = vst [vmem:[#allocation3] sm:$0x1] %v16_v0 }
   0x3   :  { %v44_v1 = vld [vmem:[%s3916_s1 + $0x18] sm:$0xff]  ;;  %v2585_v2 = vmov 2   ;;  %v2586_v3 = vmov 0   ;;  %v43_v4 = vld [vmem:[%s3916_s1 + $0x10] sm:$0xff]  ;;  %v2587_v5 = vmov 1   ;;  %v42_v6 = vld [vmem:[%s3916_s1 + $0x8] sm:$0xff] }
   0x4   :  { %2549 = vset.pattern.permute.xlu1 %v2585_v2  ;;  %2547 = vset.pattern.permute.xlu0 %v2586_v3 }
   0x5   :  { %175 = vperm.xlu1 %2549, %v44_v1   ;;  %103 = vperm.xlu0 %2547, %v44_v1  }
   0x9   :  { %2550 = vset.pattern.permute.xlu1 %v2586_v3  ;;  %2548 = vset.pattern.permute.xlu0 %v2587_v5 }
   0xa   :  { %135 = vperm.xlu0 %2548, %v44_v1   ;;  %98 = vperm.xlu1 %2550, %v43_v4  }
   0xe   :  { %2551 = vset.pattern.permute.xlu1 %v2587_v5  ;;  %127 = vperm.xlu0 %2548, %v42_v6  }
   0xf   :  { %131 = vperm.xlu1 %2551, %v43_v4  }
  0x10   :  { %18 = vsyncpa [#allocation5], 0  ;;  %v2588_v7 = vmov 3   ;;  %v41_v8 = vld [vmem:[%s3916_s1] sm:$0xff]  ;;  %v48_v9 = vld [vmem:[%s3917_s2 + $0x18] sm:$0xff]  ;;  %v3927_v23 = vmov 1.0   ;;  %v49_v39 = vlaneseq }
  0x11   :  { %v45_v10 = vld [vmem:[%s3917_s2] sm:$0xff]  ;;  %v1654_v11 = vld [vmem:[%s3919_s4 + $0x68] sm:$0xff]  ;;  %v1652_v12 = vld [vmem:[%s3919_s4 + $0x58] sm:$0xff]  ;;  %342 = vmatprep.mubr.f32.mxu0 %v3927_v23  ;;  %523 = vmatprep.mubr.f32.mxu1 %v3927_v23  ;;  %vm1622_vm0 = vcmask 261120   ;;  %vm2146_vm9 = vcmask 523264   ;;  %vm2591_vm10 = vmmov 0  }
  0x12   :  { %2556 = vset.pattern.permute.xlu0 %v2585_v2  ;;  %v1650_v13 = vld [vmem:[%s3919_s4 + $0x48] sm:$0xff]  ;;  %v47_v14 = vld [vmem:[%s3917_s2 + $0x10] sm:$0xff]  ;;  %v1648_v15 = vld [vmem:[%s3919_s4 + $0x38] sm:$0xff]  ;;  %v2757_v41 = vshrl.u32 %v49_v39, 7  ;;  %s2592_s19 = smov [#allocation4]   ;;  %vm2332_vm11 = vcmask 57344  }
  0x13   :  { %2552 = vset.pattern.permute.xlu1 %v2585_v2  ;;  %167 = vperm.xlu0 %2556, %v42_v6   ;;  %v1646_v16 = vld [vmem:[%s3919_s4 + $0x28] sm:$0xff]  ;;  %v1644_v18 = vld [vmem:[%s3919_s4 + $0x18] sm:$0xff]  ;;  %v1655_v21 = vld [vmem:[%s3919_s4 + $0x70] sm:$0xff] }
  0x14   :  { %171 = vperm.xlu1 %2552, %v43_v4   ;;  %v46_v17 = vld [vmem:[%s3917_s2 + $0x8] sm:$0xff]  ;;  %v1656_v19 = vld [vmem:[%s3919_s4 + $0x78] sm:$0xff]  ;;  %v1653_v24 = vld [vmem:[%s3919_s4 + $0x60] sm:$0xff]  ;;  %4022 = vst [vmem:[#allocation7_spill] sm:$0xff] %v2757_v41  ;;  %v2763_v43 = vsub.s32 0, %v2757_v41  ;;  %v2766_v44 = vsub.s32 1, %v2757_v41 }
  0x15   :  { %v1642_v20 = vld [vmem:[%s3919_s4 + $0x8] sm:$0xff]  ;;  %v1964_v22 = vld [vmem:[%s3921_s6 + $0x38] sm:$0xff]  ;;  %v1651_v26 = vld [vmem:[%s3919_s4 + $0x50] sm:$0xff]  ;;  %v2769_v45 = vsub.s32 2, %v2757_v41  ;;  %v2772_v46 = vsub.s32 4, %v2757_v41  ;;  %v2775_v47 = vsub.s32 5, %v2757_v41 }
  0x16   :  { %v1962_v25 = vld [vmem:[%s3921_s6 + $0x28] sm:$0xff]  ;;  %v1960_v27 = vld [vmem:[%s3921_s6 + $0x18] sm:$0xff]  ;;  %v1649_v28 = vld [vmem:[%s3919_s4 + $0x40] sm:$0xff]  ;;  %4023 = vst [vmem:[#allocation8_spill] sm:$0xff] %v2763_v43  ;;  %v2778_v48 = vsub.s32 6, %v2757_v41  ;;  %v2787_v51 = vsub.s32 3, %v2757_v41 }
  0x17   :  { %2557 = vset.pattern.permute.xlu0 %v2588_v7  ;;  %v1958_v29 = vld [vmem:[%s3921_s6 + $0x8] sm:$0xff]  ;;  %v1647_v30 = vld [vmem:[%s3919_s4 + $0x30] sm:$0xff]  ;;  %v2125_v31 = vld [vmem:[%s3923_s8 + $0x18] sm:$0xff]  ;;  %v2790_v52 = vsub.s32 7, %v2757_v41 }
  0x18   :  { %2553 = vset.pattern.permute.xlu1 %v2586_v3  ;;  %215 = vperm.xlu0 %2557, %v44_v1   ;;  %v1645_v32 = vld [vmem:[%s3919_s4 + $0x20] sm:$0xff]  ;;  %v2123_v33 = vld [vmem:[%s3923_s8 + $0x8] sm:$0xff]  ;;  %v1643_v34 = vld [vmem:[%s3919_s4 + $0x10] sm:$0xff] }
  0x19   :  { %93 = vperm.xlu1 %2553, %v42_v6   ;;  %v2249_v35 = vld [vmem:[#allocation3] sm:$0x1]  ;;  %v1641_v36 = vld [vmem:[%s3919_s4] sm:$0xff]  ;;  %v1963_v37 = vld [vmem:[%s3921_s6 + $0x30] sm:$0xff]  ;;  %4024 = vst [vmem:[#allocation9_spill] sm:$0xff] %v2790_v52  ;;  %s2340_s4 = sshll.u32 %s2592_s19, 4  ;;  %s2341_s4 = int_to_ptr.vmem [resolvable:$true] %s2340_s4 }
  0x1a   :  { %v1961_v38 = vld [vmem:[%s3921_s6 + $0x20] sm:$0xff]  ;;  %v1959_v40 = vld [vmem:[%s3921_s6 + $0x10] sm:$0xff]  ;;  %v79_v50 = vld [vmem:[%s3915_s0 + $0x8] sm:$0xff]  ;;  %s2563_s20 = scalar_lea.vmem %s2341_s4, 16  ;;  %p2568_p1 = scmp.lt.s32.totalorder %s2341_s4, %s2341_s4 }
  0x1b   :  { %v1957_v42 = vld [vmem:[%s3921_s6] sm:$0xff]  ;;  %v2124_v49 = vld [vmem:[%s3923_s8 + $0x10] sm:$0xff]  ;;  %v2796_v54 = vrot.slane %v79_v50, %v2763_v43  ;;  %v2799_v55 = vrot.slane %v79_v50, %v2766_v44  ;;  %v2802_v56 = vrot.slane %v79_v50, %v2769_v45  ;;  %v2805_v57 = vrot.slane %v79_v50, %v2772_v46  ;;  %v81_v1 = vld [vmem:[%s3915_s0 + $0x18] sm:$0xff]  ;;  %p2564_p0 = scmp.ne.s32.totalorder %s2341_s4, %s2563_s20  ;;  %s2567_s6 = scalar_lea.vmem %s2341_s4, 32 }
  0x1c   :  { %207 = vperm.xlu0 %2557, %v42_v6   ;;  %v78_v53 = vld [vmem:[%s3915_s0] sm:$0xff]  ;;  %v2808_v58 = vrot.slane %v79_v50, %v2775_v47  ;;  %v2811_v59 = vrot.slane %v79_v50, %v2778_v48  ;;  %v2817_v61 = vrot.slane %v79_v50, %v2787_v51  ;;  %v80_v6 = vld [vmem:[%s3915_s0 + $0x10] sm:$0xff]  ;;  %p2569_p2 = scmp.lt.s32.totalorder %s2567_s6, %s2563_s20 }
  0x1d   :  { %2554 = vset.pattern.permute.xlu1 %v2588_v7  ;;  %4025 = vst [vmem:[#allocation10_spill] sm:$0xff] %v2799_v55  ;;  %4026 = vst [vmem:[#allocation11_spill] sm:$0xff] %v2802_v56  ;;  %v2122_v60 = vld [vmem:[%s3923_s8] sm:$0xff]  ;;  %v2820_v62 = vrot.slane %v78_v53, %v2763_v43  ;;  %v2823_v63 = vrot.slane %v78_v53, %v2766_v44  ;;  %v2826_v0 = vrot.slane %v78_v53, %v2769_v45  ;;  %v2942_v39 = vld [vmem:[%s3915_s0 + $0x30] sm:$0xff] }
  0x1e   :  { %211 = vperm.xlu1 %2554, %v43_v4   ;;  %4027 = vst [vmem:[#allocation12_spill] sm:$0xff] %v2808_v58  ;;  %4028 = vst [vmem:[#allocation13_spill] sm:$0xff] %v2811_v59  ;;  %v2838_v4 = vrot.slane %v78_v53, %v2772_v46  ;;  %v2847_v7 = vrot.slane %v78_v53, %v2778_v48  ;;  %p2570_p3 = por %p2569_p2, %p2568_p1 }
  0x1f   :  { %4029 = vst [vmem:[#allocation14_spill] sm:$0xff] %v2823_v63  ;;  %4030 = vst [vmem:[#allocation15_spill] sm:$0xff] %v2826_v0 }
  0x20   :  { %203 = vperm.xlu0 %2557, %v41_v8   ;;  %4031 = vst [vmem:[#allocation16_spill] sm:$0xff] %v2847_v7  ;;  %4052 = vst [vmem:[#allocation37_spill] sm:$0xff] %v2942_v39  ;;  %p2571_p4 = pnand %p2570_p3, %p2564_p0 }
  0x22   :  { %2555 = vset.pattern.permute.xlu1 %v2586_v3 }
  0x23   :  { %259 = vperm.xlu1 %2555, %v48_v9   ;;  %v2853_v9 = vrot.slane %v81_v1, %v2763_v43 }
  0x24   :  { %2562 = vset.pattern.permute.xlu0 %v2586_v3 }
  0x25   :  { %244 = vperm.xlu0 %2562, %v45_v10   ;;  %v2856_v10 = vrot.slane %v81_v1, %v2766_v44 }
  0x27   :  { %88 = vperm.xlu1 %2555, %v41_v8   ;;  %4032 = vst [vmem:[#allocation17_spill] sm:$0xff] %v2856_v10 }
  0x29   :  { %1724 = vperm.xlu0 %2562, %v1654_v11   ;;  %v2859_v11 = vrot.slane %v81_v1, %v2769_v45 }
  0x2b   :  { %2558 = vset.pattern.permute.xlu1 %v2587_v5  ;;  %v2841_v5 = vrot.slane %v78_v53, %v2775_v47  ;;  %4033 = vst [vmem:[#allocation18_spill] sm:$0xff] %v2859_v11 }
  0x2c   :  { %123 = vperm.xlu1 %2558, %v41_v8  }
  0x2d   :  { %1714 = vperm.xlu0 %2562, %v1652_v12   ;;  %v2862_v12 = vrot.slane %v81_v1, %v2772_v46 }
  0x30   :  { %2559 = vset.pattern.permute.xlu1 %v2586_v3 }
  0x31   :  { %1704 = vperm.xlu0 %2562, %v1650_v13   ;;  %254 = vperm.xlu1 %2559, %v47_v14   ;;  %v2865_v13 = vrot.slane %v81_v1, %v2775_v47  ;;  %v2868_v14 = vrot.slane %v81_v1, %v2778_v48 }
  0x33   :  { %4034 = vst [vmem:[#allocation19_spill] sm:$0xff] %v2865_v13  ;;  %4035 = vst [vmem:[#allocation20_spill] sm:$0xff] %v2868_v14 }
  0x35   :  { %1694 = vperm.xlu0 %2562, %v1648_v15   ;;  %2560 = vset.pattern.permute.xlu1 %v2585_v2  ;;  %v2832_v2 = vrot.slane %v79_v50, %v2790_v52  ;;  %v2871_v15 = vrot.slane %v80_v6, %v2763_v43 }
  0x36   :  { %163 = vperm.xlu1 %2560, %v41_v8   ;;  %v2850_v8 = vrot.slane %v78_v53, %v2790_v52 }
  0x37   :  { %4036 = vst [vmem:[#allocation21_spill] sm:$0xff] %v2871_v15 }
  0x39   :  { %1684 = vperm.xlu0 %2562, %v1646_v16   ;;  %v2874_v16 = vrot.slane %v80_v6, %v2766_v44 }
  0x3a   :  { %2561 = vset.pattern.permute.xlu1 %v2586_v3  ;;  %v2835_v3 = vrot.slane %v78_v53, %v2787_v51 }
  0x3b   :  { %249 = vperm.xlu1 %2561, %v46_v17   ;;  %4037 = vst [vmem:[#allocation22_spill] sm:$0xff] %v2874_v16  ;;  %v2877_v17 = vrot.slane %v80_v6, %v2769_v45 }
  0x3d   :  { %1674 = vperm.xlu0 %2562, %v1644_v18   ;;  %4038 = vst [vmem:[#allocation23_spill] sm:$0xff] %v2877_v17  ;;  %v2880_v18 = vrot.slane %v80_v6, %v2772_v46 }
  0x3f   :  { %1734 = vperm.xlu1 %2561, %v1656_v19   ;;  %4039 = vst [vmem:[#allocation24_spill] sm:$0xff] %v2880_v18  ;;  %v83_v19 = vld [vmem:[%s3915_s0 + $0x28] sm:$0xff] }
  0x41   :  { %1664 = vperm.xlu0 %2562, %v1642_v20   ;;  %v82_v20 = vld [vmem:[%s3915_s0 + $0x20] sm:$0xff] }
  0x42   :  { %v2954_v50 = vrot.slane %v82_v20, %v2775_v47  ;;  %v2957_v53 = vrot.slane %v82_v20, %v2787_v51 }
  0x43   :  { %1729 = vperm.xlu1 %2561, %v1655_v21   ;;  %v2889_v21 = vrot.slane %v81_v1, %v2787_v51 }
  0x44   :  { %4056 = vst [vmem:[#allocation41_spill] sm:$0xff] %v2954_v50  ;;  %4057 = vst [vmem:[#allocation42_spill] sm:$0xff] %v2957_v53 }
  0x45   :  { %2002 = vperm.xlu0 %2562, %v1964_v22   ;;  %v2892_v22 = vrot.slane %v81_v1, %v2790_v52 }
  0x47   :  { %1719 = vperm.xlu1 %2561, %v1653_v24   ;;  %v2895_v24 = vrot.slane %v80_v6, %v2775_v47 }
  0x49   :  { %1992 = vperm.xlu0 %2562, %v1962_v25   ;;  %4040 = vst [vmem:[#allocation25_spill] sm:$0xff] %v2895_v24  ;;  %v2898_v25 = vrot.slane %v80_v6, %v2778_v48 }
  0x4b   :  { %1709 = vperm.xlu1 %2561, %v1651_v26   ;;  %4041 = vst [vmem:[#allocation26_spill] sm:$0xff] %v2898_v25  ;;  %v2901_v26 = vrot.slane %v80_v6, %v2787_v51 }
  0x4d   :  { %1982 = vperm.xlu0 %2562, %v1960_v27   ;;  %v2904_v27 = vrot.slane %v80_v6, %v2790_v52 }
  0x4f   :  { %1699 = vperm.xlu1 %2561, %v1649_v28   ;;  %v2907_v28 = vrot.slane %v83_v19, %v2763_v43 }
  0x51   :  { %1972 = vperm.xlu0 %2562, %v1958_v29   ;;  %4042 = vst [vmem:[#allocation27_spill] sm:$0xff] %v2907_v28  ;;  %v2910_v29 = vrot.slane %v83_v19, %v2766_v44 }
  0x53   :  { %1689 = vperm.xlu1 %2561, %v1647_v30   ;;  %4043 = vst [vmem:[#allocation28_spill] sm:$0xff] %v2910_v29  ;;  %v2913_v30 = vrot.slane %v83_v19, %v2769_v45 }
  0x55   :  { %2143 = vperm.xlu0 %2562, %v2125_v31   ;;  %4044 = vst [vmem:[#allocation29_spill] sm:$0xff] %v2913_v30  ;;  %v2916_v31 = vrot.slane %v83_v19, %v2772_v46 }
  0x57   :  { %1679 = vperm.xlu1 %2561, %v1645_v32   ;;  %4045 = vst [vmem:[#allocation30_spill] sm:$0xff] %v2916_v31  ;;  %v2919_v32 = vrot.slane %v83_v19, %v2778_v48 }
  0x59   :  { %2133 = vperm.xlu0 %2562, %v2123_v33   ;;  %4046 = vst [vmem:[#allocation31_spill] sm:$0xff] %v2919_v32  ;;  %v2922_v33 = vrot.slane %v82_v20, %v2769_v45 }
  0x5b   :  { %1669 = vperm.xlu1 %2561, %v1643_v34   ;;  %4047 = vst [vmem:[#allocation32_spill] sm:$0xff] %v2922_v33  ;;  %v85_v34 = vld [vmem:[%s3915_s0 + $0x38] sm:$0xff] }
  0x5c   :  { %v2963_v1 = vrot.slane %v85_v34, %v2763_v43  ;;  %v2966_v6 = vrot.slane %v85_v34, %v2769_v45  ;;  %v2972_v23 = vrot.slane %v85_v34, %v2772_v46  ;;  %v2975_v41 = vrot.slane %v85_v34, %v2778_v48 }
  0x5d   :  { %2252 = vperm.xlu0 %2562, %v2249_v35   ;;  %v2928_v35 = vrot.slane %v83_v19, %v2775_v47 }
  0x5e   :  { %4059 = vst [vmem:[#allocation44_spill] sm:$0xff] %v2963_v1  ;;  %4060 = vst [vmem:[#allocation45_spill] sm:$0xff] %v2966_v6  ;;  %v2986_v1 = vrot.slane %v85_v34, %v2775_v47  ;;  %v2990_v6 = vrot.slane %v2942_v39, %v2763_v43 }
  0x5f   :  { %1659 = vperm.xlu1 %2561, %v1641_v36   ;;  %4048 = vst [vmem:[#allocation33_spill] sm:$0xff] %v2928_v35  ;;  %v2931_v36 = vrot.slane %v82_v20, %v2763_v43  ;;  %4062 = vst [vmem:[#allocation47_spill] sm:$0xff] %v2972_v23  ;;  %v2994_v23 = vrot.slane %v2942_v39, %v2766_v44  ;;  %v3012_v43 = vrot.slane %v2942_v39, %v2775_v47 }
  0x60   :  { %4063 = vst [vmem:[#allocation48_spill] sm:$0xff] %v2975_v41  ;;  %4067 = vst [vmem:[#allocation52_spill] sm:$0xff] %v2986_v1  ;;  %v2998_v41 = vrot.slane %v2942_v39, %v2778_v48  ;;  %v3008_v1 = vrot.slane %v2942_v39, %v2772_v46 }
  0x61   :  { %4049 = vst [vmem:[#allocation34_spill] sm:$0xff] %v2931_v36  ;;  %4068 = vst [vmem:[#allocation53_spill] sm:$0xff] %v2990_v6 }
  0x62   :  { %4069 = vst [vmem:[#allocation54_spill] sm:$0xff] %v2994_v23  ;;  %4070 = vst [vmem:[#allocation55_spill] sm:$0xff] %v2998_v41 }
  0x63   :  { %1997 = vperm.xlu1 %2561, %v1963_v37   ;;  %v2934_v37 = vrot.slane %v82_v20, %v2766_v44  ;;  %4073 = vst [vmem:[#allocation58_spill] sm:$0xff] %v3008_v1  ;;  %4074 = vst [vmem:[#allocation59_spill] sm:$0xff] %v3012_v43 }
  0x65   :  { %4050 = vst [vmem:[#allocation35_spill] sm:$0xff] %v2934_v37 }
  0x67   :  { %1987 = vperm.xlu1 %2561, %v1961_v38   ;;  %v2937_v38 = vrot.slane %v82_v20, %v2778_v48 }
  0x69   :  { %4051 = vst [vmem:[#allocation36_spill] sm:$0xff] %v2937_v38  ;;  %v2979_v38 = vrot.slane %v2942_v39, %v2769_v45  ;;  %v3001_v45 = vrot.slane %v85_v34, %v2787_v51 }
  0x6b   :  { %1977 = vperm.xlu1 %2561, %v1959_v40   ;;  %v2945_v40 = vrot.slane %v83_v19, %v2787_v51  ;;  %4064 = vst [vmem:[#allocation49_spill] sm:$0xff] %v2979_v38  ;;  %4071 = vst [vmem:[#allocation56_spill] sm:$0xff] %v3001_v45  ;;  %v3004_v38 = vrot.slane %v85_v34, %v2790_v52 }
  0x6d   :  { %4053 = vst [vmem:[#allocation38_spill] sm:$0xff] %v2945_v40  ;;  %4072 = vst [vmem:[#allocation57_spill] sm:$0xff] %v3004_v38 }
  0x6f   :  { %1967 = vperm.xlu1 %2561, %v1957_v42   ;;  %v2948_v42 = vrot.slane %v83_v19, %v2790_v52  ;;  %v2969_v19 = vrot.slane %v85_v34, %v2766_v44  ;;  %v3022_v34 = vrot.slane %v2942_v39, %v2787_v51 }
  0x71   :  { %4054 = vst [vmem:[#allocation39_spill] sm:$0xff] %v2948_v42  ;;  %4061 = vst [vmem:[#allocation46_spill] sm:$0xff] %v2969_v19 }
  0x72   :  { %4075 = vst [vmem:[#allocation60_spill] sm:$0xff] %v3022_v34 }
  0x73   :  { %2138 = vperm.xlu1 %2561, %v2124_v49   ;;  %v2951_v49 = vrot.slane %v82_v20, %v2772_v46 }
  0x75   :  { %4055 = vst [vmem:[#allocation40_spill] sm:$0xff] %v2951_v49 }
  0x77   :  { %2128 = vperm.xlu1 %2561, %v2122_v60   ;;  %v2960_v60 = vrot.slane %v82_v20, %v2790_v52 }
  0x79   :  { %4058 = vst [vmem:[#allocation43_spill] sm:$0xff] %v2960_v60 }
  0x80   :  { %v2981_v20 = vpop.permute.xlu1 %175  ;;  %v2983_v60 = vpop.permute.xlu0 %103 }
  0x81   :  { %4065 = vst [vmem:[#allocation50_spill] sm:$0xff] %v2981_v20  ;;  %4066 = vst [vmem:[#allocation51_spill] sm:$0xff] %v2983_v60  ;;  %v121_v44 = vmul.f32 %v2796_v54, %v2983_v60  ;;  %v193_v48 = vmul.f32 %v2802_v56, %v2981_v20  ;;  %v370_v41 = vmul.f32 %v2805_v57, %v2983_v60 }
  0x82   :  { %v410_v46 = vmul.f32 %v2811_v59, %v2981_v20  ;;  %v120_v47 = vmul.f32 %v2820_v62, %v2983_v60  ;;  %v192_v43 = vmul.f32 %v2826_v0, %v2981_v20  ;;  %v369_v1 = vmul.f32 %v2838_v4, %v2983_v60 }
  0x83   :  { %v409_v23 = vmul.f32 %v2847_v7, %v2981_v20  ;;  %v551_v6 = vmul.f32 %v2853_v9, %v2983_v60  ;;  %v591_v51 = vmul.f32 %v2859_v11, %v2981_v20  ;;  %v732_v34 = vmul.f32 %v2862_v12, %v2983_v60 }
  0x84   :  { %v772_v19 = vmul.f32 %v2868_v14, %v2981_v20  ;;  %v550_v39 = vmul.f32 %v2871_v15, %v2983_v60  ;;  %v590_v52 = vmul.f32 %v2877_v17, %v2981_v20  ;;  %v731_v50 = vmul.f32 %v2880_v18, %v2983_v60 }
  0x85   :  { %v3040_v38 = vpop.permute.xlu0 %135  ;;  %v3042_v45 = vpop.permute.xlu1 %98  ;;  %v771_v36 = vmul.f32 %v2898_v25, %v2981_v20  ;;  %v3064_v42 = vmul.f32 %v2907_v28, %v2983_v60  ;;  %v3068_v35 = vmul.f32 %v2913_v30, %v2981_v20  ;;  %v3072_v40 = vmul.f32 %v2916_v31, %v2983_v60 }
  0x86   :  { %4076 = vst [vmem:[#allocation61_spill] sm:$0xff] %v3040_v38  ;;  %4077 = vst [vmem:[#allocation62_spill] sm:$0xff] %v3042_v45  ;;  %v153_v49 = vmul.f32 %v2799_v55, %v3040_v38  ;;  %v386_v53 = vmul.f32 %v2808_v58, %v3040_v38  ;;  %v152_v33 = vmul.f32 %v2823_v63, %v3040_v38 }
  0x87   :  { %v385_v37 = vmul.f32 %v2841_v5, %v3040_v38  ;;  %4078 = vst [vmem:[#allocation63_spill] sm:$0xff] %v3064_v42  ;;  %4079 = vst [vmem:[#allocation64_spill] sm:$0xff] %v3068_v35  ;;  %v119_v25 = vmul.f32 %v2796_v54, %v3042_v45  ;;  %v368_v28 = vmul.f32 %v2805_v57, %v3042_v45 }
  0x88   :  { %4080 = vst [vmem:[#allocation65_spill] sm:$0xff] %v3072_v40  ;;  %v161_v29 = vadd.f32 %v153_v49, %v121_v44  ;;  %v394_v18 = vadd.f32 %v386_v53, %v370_v41  ;;  %v160_v17 = vadd.f32 %v152_v33, %v120_v47  ;;  %v118_v30 = vmul.f32 %v2820_v62, %v3042_v45 }
  0x89   :  { %v393_v15 = vadd.f32 %v385_v37, %v369_v1  ;;  %v3074_v14 = vpop.permute.xlu0 %127  ;;  %v3084_v35 = vmul.f32 %v2919_v32, %v2981_v20  ;;  %v367_v41 = vmul.f32 %v2838_v4, %v3042_v45  ;;  %v567_v33 = vmul.f32 %v2856_v10, %v3040_v38 }
  0x8a   :  { %v3086_v31 = vpop.permute.xlu1 %131  ;;  %v748_v37 = vmul.f32 %v2865_v13, %v3040_v38  ;;  %v566_v49 = vmul.f32 %v2874_v16, %v3040_v38  ;;  %v747_v47 = vmul.f32 %v2895_v24, %v3040_v38  ;;  %v3104_v32 = vadd.f32 %v193_v48, %v161_v29 }
  0x8b   :  { %4081 = vst [vmem:[#allocation66_spill] sm:$0xff] %v3084_v35  ;;  %4082 = vst [vmem:[#allocation67_spill] sm:$0xff] %v3086_v31  ;;  %v151_v53 = vmul.f32 %v2799_v55, %v3086_v31  ;;  %v384_v1 = vmul.f32 %v2808_v58, %v3086_v31  ;;  %v150_v44 = vmul.f32 %v2823_v63, %v3086_v31 }
  0x8c   :  { %v3106_v35 = vadd.f32 %v410_v46, %v394_v18  ;;  %v3108_v20 = vadd.f32 %v192_v43, %v160_v17  ;;  %v3110_v40 = vadd.f32 %v409_v23, %v393_v15  ;;  %v383_v60 = vmul.f32 %v2841_v5, %v3086_v31 }
  0x8d   :  { %v149_v42 = vmul.f32 %v2799_v55, %v3074_v14  ;;  %v382_v16 = vmul.f32 %v2808_v58, %v3074_v14  ;;  %v148_v38 = vmul.f32 %v2823_v63, %v3074_v14  ;;  %v381_v43 = vmul.f32 %v2841_v5, %v3074_v14 }
  0x8e   :  { %v3120_v29 = vpop.permute.xlu0 %167  ;;  %v575_v17 = vadd.f32 %v567_v33, %v551_v6  ;;  %v756_v23 = vadd.f32 %v748_v37, %v732_v34  ;;  %v574_v15 = vadd.f32 %v566_v49, %v550_v39  ;;  %v159_v48 = vadd.f32 %v151_v53, %v119_v25 }
  0x8f   :  { %4083 = vst [vmem:[#allocation68_spill] sm:$0xff] %v3120_v29  ;;  %v3124_v18 = vpop.permute.xlu1 %171  ;;  %v392_v46 = vadd.f32 %v384_v1, %v368_v28  ;;  %v158_v24 = vadd.f32 %v150_v44, %v118_v30  ;;  %v755_v55 = vadd.f32 %v747_v47, %v731_v50  ;;  %v391_v34 = vadd.f32 %v383_v60, %v367_v41 }
  0x90   :  { %4084 = vst [vmem:[#allocation69_spill] sm:$0xff] %v3124_v18  ;;  %v191_v58 = vmul.f32 %v2802_v56, %v3124_v18  ;;  %v408_v63 = vmul.f32 %v2811_v59, %v3124_v18  ;;  %v190_v13 = vmul.f32 %v2826_v0, %v3124_v18  ;;  %v407_v6 = vmul.f32 %v2847_v7, %v3124_v18 }
  0x91   :  { %v189_v39 = vmul.f32 %v2802_v56, %v3120_v29  ;;  %v406_v25 = vmul.f32 %v2811_v59, %v3120_v29  ;;  %v188_v28 = vmul.f32 %v2826_v0, %v3120_v29  ;;  %v405_v30 = vmul.f32 %v2847_v7, %v3120_v29 }
  0x92   :  { %v3142_v50 = vadd.f32 %v591_v51, %v575_v17  ;;  %v3144_v33 = vadd.f32 %v772_v19, %v756_v23  ;;  %v3146_v37 = vadd.f32 %v590_v52, %v574_v15  ;;  %v199_v60 = vadd.f32 %v191_v58, %v159_v48 }
  0x93   :  { %v3148_v49 = vpop.permute.xlu0 %215  ;;  %v416_v41 = vadd.f32 %v408_v63, %v392_v46  ;;  %v198_v53 = vadd.f32 %v190_v13, %v158_v24  ;;  %v3150_v1 = vadd.f32 %v771_v36, %v755_v55  ;;  %v415_v47 = vadd.f32 %v407_v6, %v391_v34 }
  0x94   :  { %4085 = vst [vmem:[#allocation70_spill] sm:$0xff] %v3148_v49  ;;  %v3152_v44 = vpop.permute.xlu1 %93  ;;  %v3156_v0 = vmul.f32 %v2853_v9, %v3042_v45  ;;  %v3160_v19 = vmul.f32 %v2856_v10, %v3086_v31  ;;  %v3164_v52 = vmul.f32 %v2859_v11, %v3124_v18  ;;  %v233_v24 = vmul.f32 %v2817_v61, %v3148_v49 }
  0x95   :  { %v117_v58 = vmul.f32 %v2796_v54, %v3152_v44  ;;  %v366_v55 = vmul.f32 %v2805_v57, %v3152_v44  ;;  %v116_v63 = vmul.f32 %v2820_v62, %v3152_v44  ;;  %v365_v13 = vmul.f32 %v2838_v4, %v3152_v44 }
  0x96   :  { %v434_v36 = vmul.f32 %v2832_v2, %v3148_v49  ;;  %v232_v51 = vmul.f32 %v2835_v3, %v3148_v49  ;;  %v433_v17 = vmul.f32 %v2850_v8, %v3148_v49 }
  0x97   :  { %v3182_v23 = vpop.permute.xlu0 %207  ;;  %v157_v15 = vadd.f32 %v149_v42, %v117_v58  ;;  %v390_v48 = vadd.f32 %v382_v16, %v366_v55  ;;  %v156_v46 = vadd.f32 %v148_v38, %v116_v63  ;;  %v389_v6 = vadd.f32 %v381_v43, %v365_v13 }
  0x98   :  { %v229_v34 = vmul.f32 %v2817_v61, %v3182_v23  ;;  %v430_v7 = vmul.f32 %v2832_v2, %v3182_v23  ;;  %v228_v59 = vmul.f32 %v2835_v3, %v3182_v23  ;;  %v429_v56 = vmul.f32 %v2850_v8, %v3182_v23 }
  0x99   :  { %v3192_v11 = vpop.permute.xlu1 %211  ;;  %v197_v29 = vadd.f32 %v189_v39, %v157_v15  ;;  %v414_v10 = vadd.f32 %v406_v25, %v390_v48  ;;  %v196_v42 = vadd.f32 %v188_v28, %v156_v46  ;;  %v413_v16 = vadd.f32 %v405_v30, %v389_v6 }
  0x9a   :  { %4086 = vst [vmem:[#allocation71_spill] sm:$0xff] %v3192_v11  ;;  %v231_v38 = vmul.f32 %v2817_v61, %v3192_v11  ;;  %v432_v43 = vmul.f32 %v2832_v2, %v3192_v11  ;;  %v230_v58 = vmul.f32 %v2835_v3, %v3192_v11  ;;  %v730_v55 = vmul.f32 %v2862_v12, %v3042_v45 }
  0x9b   :  { %v241_v63 = vadd.f32 %v233_v24, %v3104_v32  ;;  %v442_v13 = vadd.f32 %v434_v36, %v3106_v35  ;;  %v240_v39 = vadd.f32 %v232_v51, %v3108_v20  ;;  %v441_v25 = vadd.f32 %v433_v17, %v3110_v40 }
  0x9c   :  { %v431_v28 = vmul.f32 %v2850_v8, %v3192_v11  ;;  %v3208_v30 = vadd.f32 %v229_v34, %v197_v29  ;;  %v3210_v15 = vadd.f32 %v430_v7, %v414_v10  ;;  %v3212_v48 = vadd.f32 %v228_v59, %v196_v42  ;;  %v3232_v10 = vpop.permute.xlu0 %203 }
  0x9d   :  { %v3214_v46 = vadd.f32 %v231_v38, %v199_v60  ;;  %v3216_v6 = vadd.f32 %v432_v43, %v416_v41  ;;  %v3218_v32 = vadd.f32 %v230_v58, %v198_v53  ;;  %v3220_v35 = vadd.f32 %v429_v56, %v413_v16  ;;  %4088 = vst [vmem:[#allocation73_spill] sm:$0xff] %v3232_v10 }
  0x9e   :  { %v3222_v20 = vpop.permute.xlu1 %259  ;;  %v615_v40 = vmul.f32 %v2889_v21, %v3148_v49  ;;  %v796_v29 = vmul.f32 %v2892_v22, %v3148_v49  ;;  %v614_v59 = vmul.f32 %v2901_v26, %v3148_v49  ;;  %v795_v7 = vmul.f32 %v2904_v27, %v3148_v49 }
  0x9f   :  { %4087 = vst [vmem:[#allocation72_spill] sm:$0xff] %v3222_v20  ;;  %v269_v60 = vadd.f32 %v3222_v20, %v241_v63  ;;  %v450_v56 = vadd.f32 %v442_v13, %v3222_v20  ;;  %v268_v41 = vadd.f32 %v3222_v20, %v240_v39  ;;  %v449_v53 = vadd.f32 %v441_v25, %v3222_v20  ;;  %v4090_v25 = vld [vmem:[#allocation19_spill] sm:$0xff] }
  0xa0   :  { %v439_v24 = vadd.f32 %v431_v28, %v415_v47  ;;  %v3240_v36 = vmul.f32 %v2817_v61, %v3232_v10  ;;  %v623_v51 = vadd.f32 %v615_v40, %v3142_v50  ;;  %v804_v17 = vadd.f32 %v796_v29, %v3144_v33  ;;  %v4091_v29 = vld [vmem:[#allocation20_spill] sm:$0xff] }
  0xa1   :  { %v277_v34 = vmax.f32 %v269_v60, 0.0  ;;  %v458_v42 = vmax.f32 %v450_v56, 0.0  ;;  %v276_v16 = vmax.f32 %v268_v41, 0.0  ;;  %v457_v38 = vmax.f32 %v449_v53, 0.0  ;;  %v4094_v41 = vld [vmem:[#allocation21_spill] sm:$0xff]  ;;  %v4095_v53 = vld [vmem:[#allocation10_spill] sm:$0xff] }
  0xa2   :  { %v3244_v43 = vpop.permute.xlu1 %88  ;;  %v3248_v58 = vmul.f32 %v2832_v2, %v3232_v10  ;;  %v3252_v47 = vmul.f32 %v2835_v3, %v3232_v10  ;;  %v622_v61 = vadd.f32 %v614_v59, %v3146_v37  ;;  %v803_v50 = vadd.f32 %v795_v7, %v3150_v1 }
  0xa3   :  { %302 = vmatprep.subr.mxu0 %v277_v34  ;;  %483 = vmatprep.subr.mxu1 %v458_v42  ;;  %v3258_v33 = vmul.f32 %v2850_v8, %v3232_v10  ;;  %v3261_v63 = vadd.f32 %v623_v51, %v3222_v20  ;;  %v3264_v2 = vadd.f32 %v804_v17, %v3222_v20  ;;  %v4096_v51 = vld [vmem:[#allocation12_spill] sm:$0xff]  ;;  %v4097_v34 = vld [vmem:[#allocation14_spill] sm:$0xff] }
  0xa4   :  { %303 = vmatpush1.xpose.msra.mxu0 %v276_v16  ;;  %484 = vmatpush1.xpose.msra.mxu1 %v457_v38  ;;  %v115_v3 = vmul.f32 %v2796_v54, %v3244_v43  ;;  %v3269_v37 = vadd.f32 %v622_v61, %v3222_v20  ;;  %v3272_v1 = vadd.f32 %v803_v50, %v3222_v20  ;;  %v4098_v38 = vld [vmem:[#allocation23_spill] sm:$0xff] }
  0xa5   :  { %4089 = vst [vmem:[#allocation74_spill] sm:$0xff] %v3261_v63  ;;  %v364_v8 = vmul.f32 %v2805_v57, %v3244_v43  ;;  %v573_v13 = vadd.f32 %v3160_v19, %v3156_v0  ;;  %v613_v39 = vmul.f32 %v2889_v21, %v3192_v11  ;;  %v746_v28 = vmul.f32 %v4090_v25, %v3086_v31  ;;  %v4092_v57 = vld [vmem:[#allocation22_spill] sm:$0xff] }
  0xa6   :  { %v114_v54 = vmul.f32 %v2820_v62, %v3244_v43  ;;  %v363_v40 = vmul.f32 %v2838_v4, %v3244_v43  ;;  %v770_v59 = vmul.f32 %v4091_v29, %v3124_v18  ;;  %v564_v7 = vmul.f32 %v4092_v57, %v3086_v31 }
  0xa7   :  { %v3290_v60 = vpop.permute.xlu1 %123  ;;  %v597_v0 = vadd.f32 %v3164_v52, %v573_v13  ;;  %v754_v19 = vadd.f32 %v746_v28, %v730_v55  ;;  %v794_v56 = vmul.f32 %v2892_v22, %v3192_v11  ;;  %v548_v62 = vmul.f32 %v4094_v41, %v3042_v45 }
  0xa8   :  { %4093 = vst [vmem:[#allocation19_spill] sm:$0xff] %v3290_v60  ;;  %v147_v4 = vmul.f32 %v4095_v53, %v3290_v60  ;;  %v380_v17 = vmul.f32 %v4096_v51, %v3290_v60  ;;  %v146_v42 = vmul.f32 %v4097_v34, %v3290_v60  ;;  %v379_v16 = vmul.f32 %v2841_v5, %v3290_v60  ;;  %v4099_v51 = vld [vmem:[#allocation24_spill] sm:$0xff]  ;;  %v4100_v5 = vld [vmem:[#allocation25_spill] sm:$0xff] }
  0xa9   :  { %v621_v55 = vadd.f32 %v613_v39, %v597_v0  ;;  %v588_v61 = vmul.f32 %v4098_v38, %v3124_v18  ;;  %v612_v50 = vmul.f32 %v2901_v26, %v3192_v11  ;;  %v778_v28 = vadd.f32 %v770_v59, %v754_v19  ;;  %v4101_v0 = vld [vmem:[#allocation26_spill] sm:$0xff]  ;;  %v4102_v59 = vld [vmem:[#allocation17_spill] sm:$0xff] }
  0xaa   :  { %v155_v13 = vadd.f32 %v147_v4, %v115_v3  ;;  %v572_v53 = vadd.f32 %v564_v7, %v548_v62  ;;  %v729_v20 = vmul.f32 %v4099_v51, %v3042_v45  ;;  %v388_v49 = vadd.f32 %v380_v17, %v364_v8  ;;  %v4103_v17 = vld [vmem:[#allocation68_spill] sm:$0xff] }
  0xab   :  { %v154_v34 = vadd.f32 %v146_v42, %v114_v54  ;;  %v387_v10 = vadd.f32 %v379_v16, %v363_v40  ;;  %v745_v60 = vmul.f32 %v4100_v5, %v3086_v31  ;;  %v802_v39 = vadd.f32 %v794_v56, %v778_v28  ;;  %v4104_v42 = vld [vmem:[#allocation18_spill] sm:$0xff] }
  0xac   :  { %v3314_v52 = vpop.permute.xlu1 %254  ;;  %v769_v63 = vmul.f32 %v4101_v0, %v3124_v18  ;;  %v547_v3 = vmul.f32 %v2853_v9, %v3152_v44  ;;  %v563_v7 = vmul.f32 %v4102_v59, %v3074_v14  ;;  %v596_v56 = vadd.f32 %v588_v61, %v572_v53 }
  0xad   :  { %v267_v8 = vadd.f32 %v3314_v52, %v3214_v46  ;;  %v448_v54 = vadd.f32 %v3216_v6, %v3314_v52  ;;  %v266_v40 = vadd.f32 %v3314_v52, %v3218_v32  ;;  %v447_v19 = vadd.f32 %v439_v24, %v3314_v52 }
  0xae   :  { %v753_v62 = vadd.f32 %v745_v60, %v729_v20  ;;  %v793_v4 = vmul.f32 %v2904_v27, %v3192_v11  ;;  %v587_v16 = vmul.f32 %v4104_v42, %v4103_v17  ;;  %v3334_v45 = vadd.f32 %v621_v55, %v3314_v52  ;;  %v4105_v55 = vld [vmem:[#allocation11_spill] sm:$0xff] }
  0xaf   :  { %v275_v28 = vmax.f32 %v267_v8, 0.0  ;;  %v456_v18 = vmax.f32 %v448_v54, 0.0  ;;  %v274_v31 = vmax.f32 %v266_v40, 0.0  ;;  %v455_v46 = vmax.f32 %v447_v19, 0.0 }
  0xb0   :  { %v3337_v6 = vadd.f32 %v802_v39, %v3314_v52  ;;  %v620_v32 = vadd.f32 %v612_v50, %v596_v56  ;;  %v777_v24 = vadd.f32 %v769_v63, %v753_v62  ;;  %v571_v61 = vadd.f32 %v563_v7, %v547_v3  ;;  %v4106_v63 = vld [vmem:[#allocation13_spill] sm:$0xff]  ;;  %v4108_v3 = vld [vmem:[#allocation16_spill] sm:$0xff] }
  0xb1   :  { %304 = vmatprep.subr.mxu0 %v275_v28  ;;  %485 = vmatprep.subr.mxu1 %v456_v18  ;;  %v3339_v20 = vpop.permute.xlu1 %163  ;;  %v611_v53 = vmul.f32 %v2889_v21, %v3182_v23  ;;  %v728_v8 = vmul.f32 %v2862_v12, %v3152_v44  ;;  %v4107_v18 = vld [vmem:[#allocation15_spill] sm:$0xff] }
  0xb2   :  { %305 = vmatpush1.xpose.msra.mxu0 %v274_v31  ;;  %486 = vmatpush1.xpose.msra.mxu1 %v455_v46  ;;  %v187_v39 = vmul.f32 %v4105_v55, %v3339_v20  ;;  %v404_v50 = vmul.f32 %v4106_v63, %v3339_v20  ;;  %v186_v54 = vmul.f32 %v4107_v18, %v3339_v20 }
  0xb3   :  { %v403_v7 = vmul.f32 %v4108_v3, %v3339_v20  ;;  %v3356_v19 = vadd.f32 %v620_v32, %v3314_v52  ;;  %v595_v56 = vadd.f32 %v587_v16, %v571_v61  ;;  %v744_v31 = vmul.f32 %v4090_v25, %v3074_v14 }
  0xb4   :  { %v195_v62 = vadd.f32 %v187_v39, %v155_v13  ;;  %v412_v28 = vadd.f32 %v404_v50, %v388_v49  ;;  %v194_v46 = vadd.f32 %v186_v54, %v154_v34  ;;  %v801_v55 = vadd.f32 %v793_v4, %v777_v24  ;;  %v3369_v49 = vpop.permute.xlu0 %244 }
  0xb5   :  { %v411_v63 = vadd.f32 %v403_v7, %v387_v10  ;;  %v619_v60 = vadd.f32 %v611_v53, %v595_v56  ;;  %v752_v11 = vadd.f32 %v744_v31, %v728_v8  ;;  %v768_v18 = vmul.f32 %v4091_v29, %v4103_v17 }
  0xb6   :  { %v3362_v40 = vpop.permute.xlu1 %249  ;;  %v235_v3 = vadd.f32 %v3240_v36, %v195_v62  ;;  %v436_v32 = vadd.f32 %v3248_v58, %v412_v28  ;;  %v234_v16 = vadd.f32 %v3252_v47, %v194_v46  ;;  %v792_v13 = vmul.f32 %v2892_v22, %v3182_v23 }
  0xb7   :  { %v265_v10 = vadd.f32 %v3362_v40, %v3208_v30  ;;  %v446_v34 = vadd.f32 %v3210_v15, %v3362_v40  ;;  %v264_v4 = vadd.f32 %v3362_v40, %v3212_v48  ;;  %v445_v36 = vadd.f32 %v3220_v35, %v3362_v40 }
  0xb8   :  { %v263_v58 = vadd.f32 %v3369_v49, %v235_v3  ;;  %v444_v47 = vadd.f32 %v436_v32, %v3369_v49  ;;  %v262_v24 = vadd.f32 %v3369_v49, %v234_v16  ;;  %v435_v61 = vadd.f32 %v3258_v33, %v411_v63 }
  0xb9   :  { %v273_v53 = vmax.f32 %v265_v10, 0.0  ;;  %v454_v8 = vmax.f32 %v446_v34, 0.0  ;;  %v272_v30 = vmax.f32 %v264_v4, 0.0  ;;  %v453_v39 = vmax.f32 %v445_v36, 0.0 }
  0xba   :  { %v271_v50 = vmax.f32 %v263_v58, 0.0  ;;  %v452_v15 = vmax.f32 %v444_v47, 0.0  ;;  %v443_v54 = vadd.f32 %v435_v61, %v3369_v49  ;;  %v3385_v48 = vadd.f32 %v801_v55, %v3314_v52  ;;  %v4110_v47 = vld [vmem:[#allocation73_spill] sm:$0xff]  ;;  %v4111_v61 = vld [vmem:[#allocation74_spill] sm:$0xff] }
  0xbb   :  { %306 = vmatprep.subr.mxu0 %v273_v53  ;;  %487 = vmatprep.subr.mxu1 %v454_v8  ;;  %v819_v35 = vmax.f32 %v3272_v1, 0.0  ;;  %v3389_v7 = vadd.f32 %v619_v60, %v3362_v40  ;;  %v776_v56 = vadd.f32 %v768_v18, %v752_v11  ;;  %v546_v33 = vmul.f32 %v4094_v41, %v3152_v44 }
  0xbc   :  { %307 = vmatpush1.xpose.msra.mxu0 %v272_v30  ;;  %488 = vmatpush1.xpose.msra.mxu1 %v453_v39  ;;  %v270_v31 = vmax.f32 %v262_v24, 0.0  ;;  %v562_v62 = vmul.f32 %v4092_v57, %v3074_v14  ;;  %v586_v28 = vmul.f32 %v4098_v38, %v4103_v17  ;;  %v610_v46 = vmul.f32 %v2901_v26, %v3182_v23 }
  0xbd   :  { %308 = vmatprep.subr.mxu0 %v271_v50  ;;  %489 = vmatprep.subr.mxu1 %v452_v15  ;;  %v451_v1 = vmax.f32 %v443_v54, 0.0  ;;  %v800_v60 = vadd.f32 %v792_v13, %v776_v56  ;;  %v727_v11 = vmul.f32 %v4099_v51, %v3152_v44  ;;  %v743_v55 = vmul.f32 %v4100_v5, %v3074_v14  ;;  %v4109_v13 = vld [vmem:[#allocation19_spill] sm:$0xff] }
  0xbe   :  { %v570_v63 = vadd.f32 %v562_v62, %v546_v33  ;;  %v767_v18 = vmul.f32 %v4101_v0, %v4103_v17  ;;  %v791_v3 = vmul.f32 %v2904_v27, %v3182_v23  ;;  %v545_v32 = vmul.f32 %v2853_v9, %v3244_v43 }
  0xbf   :  { %v808_v16 = vadd.f32 %v800_v60, %v3362_v40  ;;  %v751_v10 = vadd.f32 %v743_v55, %v727_v11  ;;  %v561_v34 = vmul.f32 %v4102_v59, %v4109_v13  ;;  %v585_v4 = vmul.f32 %v4104_v42, %v3339_v20 }
  0xc0   :  { %309 = vmatpush1.xpose.msra.mxu0 %v270_v31  ;;  %490 = vmatpush1.xpose.msra.mxu1 %v451_v1  ;;  %v637_v36 = vmax.f32 %v3334_v45, 0.0  ;;  %v594_v58 = vadd.f32 %v586_v28, %v570_v63  ;;  %v609_v24 = vmul.f32 %v2889_v21, %v4110_v47  ;;  %v726_v9 = vmul.f32 %v2862_v12, %v3244_v43 }
  0xc1   :  { %v4112_v53 = vmax.f32 %v4111_v61, 0.0  ;;  %v4113_v8 = vmax.f32 %v3264_v2, 0.0  ;;  %v818_v59 = vmax.f32 %v3337_v6, 0.0  ;;  %v775_v42 = vadd.f32 %v767_v18, %v751_v10  ;;  %v4118_v10 = vld [vmem:[#allocation70_spill] sm:$0xff]  ;;  %v4122_v61 = vld [vmem:[#allocation63_spill] sm:$0xff] }
  0xc2   :  { %v569_v30 = vadd.f32 %v561_v34, %v545_v32  ;;  %v742_v45 = vmul.f32 %v4090_v25, %v4109_v13  ;;  %v618_v39 = vadd.f32 %v610_v46, %v594_v58  ;;  %v766_v21 = vmul.f32 %v4091_v29, %v3339_v20  ;;  %v4117_v32 = vld [vmem:[#allocation28_spill] sm:$0xff]  ;;  %v4119_v34 = vld [vmem:[#allocation38_spill] sm:$0xff] }
  0xc3   :  { %664 = vmatprep.subr.mxu0 %v4112_v53  ;;  %845 = vmatprep.subr.mxu1 %v4113_v8  ;;  %v790_v12 = vmul.f32 %v2892_v22, %v4110_v47  ;;  %v544_v50 = vmul.f32 %v4094_v41, %v3244_v43  ;;  %v4114_v15 = vmov 1.0   ;;  %v636_v2 = vmax.f32 %v3356_v19, 0.0  ;;  %v4123_v8 = vld [vmem:[#allocation51_spill] sm:$0xff] }
  0xc4   :  { %343 = vmatmul.mubr.f32.vlgmr.msra.gmra.mxu0 %v4114_v15  ;;  %524 = vmatmul.mubr.f32.vlgmr.msra.gmra.mxu1 %v4114_v15  ;;  %v799_v6 = vadd.f32 %v791_v3, %v775_v42  ;;  %v593_v54 = vadd.f32 %v585_v4, %v569_v30  ;;  %v750_v56 = vadd.f32 %v742_v45, %v726_v9  ;;  %v4115_v25 = vmax.f32 %v3269_v37, 0.0  ;;  %v4125_v45 = vld [vmem:[#allocation65_spill] sm:$0xff] }
  0xc5   :  { %846 = vmatpush1.xpose.msra.mxu1 %v819_v35  ;;  %v817_v29 = vmax.f32 %v3385_v48, 0.0  ;;  %v626_v22 = vadd.f32 %v618_v39, %v3362_v40  ;;  %v560_v41 = vmul.f32 %v4092_v57, %v4109_v13  ;;  %v584_v33 = vmul.f32 %v4098_v38, %v3339_v20  ;;  %704 = vmatprep.mubr.f32.mxu0 %v4114_v15 }
  0xc6   :  { %665 = vmatpush1.xpose.msra.mxu0 %v4115_v25  ;;  %847 = vmatprep.subr.mxu1 %v818_v59  ;;  %v635_v19 = vmax.f32 %v3389_v7, 0.0  ;;  %v807_v31 = vadd.f32 %v799_v6, %v3362_v40  ;;  %v617_v62 = vadd.f32 %v609_v24, %v593_v54  ;;  %v774_v37 = vadd.f32 %v766_v21, %v750_v56  ;;  %v4124_v59 = vld [vmem:[#allocation34_spill] sm:$0xff]  ;;  %v4126_v21 = vld [vmem:[#allocation35_spill] sm:$0xff]  ;;  %v4129_v56 = vld [vmem:[#allocation32_spill] sm:$0xff] }
  0xc7   :  { %666 = vmatprep.subr.mxu0 %v637_v36  ;;  %v816_v28 = vmax.f32 %v808_v16, 0.0  ;;  %v634_v35 = vmax.f32 %v626_v22, 0.0  ;;  %v568_v46 = vadd.f32 %v560_v41, %v544_v50  ;;  %v608_v48 = vmul.f32 %v2901_v26, %v4110_v47  ;;  %885 = vmatprep.mubr.f32.mxu1 %v4114_v15  ;;  %v4120_v36 = vld [vmem:[#allocation33_spill] sm:$0xff]  ;;  %v4128_v54 = vld [vmem:[#allocation50_spill] sm:$0xff] }
  0xc8   :  { %v625_v57 = vadd.f32 %v617_v62, %v3369_v49  ;;  %v798_v38 = vadd.f32 %v790_v12, %v774_v37  ;;  %v725_v7 = vmul.f32 %v4099_v51, %v3244_v43  ;;  %v741_v1 = vmul.f32 %v4100_v5, %v4109_v13  ;;  %v4116_v51 = vld [vmem:[#allocation61_spill] sm:$0xff]  ;;  %v4130_v22 = vld [vmem:[#allocation66_spill] sm:$0xff] }
  0xc9   :  { %848 = vmatpush1.xpose.msra.mxu1 %v817_v29  ;;  %v815_v60 = vmax.f32 %v807_v31, 0.0  ;;  %v592_v11 = vadd.f32 %v584_v33, %v568_v46  ;;  %v765_v26 = vmul.f32 %v4101_v0, %v3339_v20  ;;  %v789_v55 = vmul.f32 %v2904_v27, %v4110_v47  ;;  %v4121_v0 = vld [vmem:[#allocation39_spill] sm:$0xff]  ;;  %v4133_v46 = vld [vmem:[#allocation41_spill] sm:$0xff] }
  0xca   :  { %667 = vmatpush1.xpose.msra.mxu0 %v636_v2  ;;  %849 = vmatprep.subr.mxu1 %v816_v28  ;;  %v633_v63 = vmax.f32 %v625_v57, 0.0  ;;  %v806_v18 = vadd.f32 %v798_v38, %v3369_v49  ;;  %v749_v3 = vadd.f32 %v741_v1, %v725_v7  ;;  %v929_v16 = vmul.f32 %v4117_v32, %v4116_v51  ;;  %v4127_v2 = vld [vmem:[#allocation64_spill] sm:$0xff] }
  0xcb   :  { %668 = vmatprep.subr.mxu0 %v635_v19  ;;  %v616_v5 = vadd.f32 %v608_v48, %v592_v11  ;;  %v977_v4 = vmul.f32 %v4119_v34, %v4118_v10  ;;  %v1110_v58 = vmul.f32 %v4120_v36, %v4116_v51  ;;  %v1158_v24 = vmul.f32 %v4121_v0, %v4118_v10  ;;  %v4131_v19 = vld [vmem:[#allocation42_spill] sm:$0xff]  ;;  %v4132_v28 = vld [vmem:[#allocation40_spill] sm:$0xff] }
  0xcc   :  { %v814_v27 = vmax.f32 %v806_v18, 0.0  ;;  %v773_v9 = vadd.f32 %v765_v26, %v749_v3  ;;  %v937_v53 = vadd.f32 %v929_v16, %v4122_v61  ;;  %v912_v42 = vmul.f32 %v4124_v59, %v4123_v8  ;;  %v4134_v7 = vld [vmem:[#allocation36_spill] sm:$0xff]  ;;  %v4137_v3 = vld [vmem:[#allocation62_spill] sm:$0xff]  ;;  %v4138_v16 = vld [vmem:[#allocation27_spill] sm:$0xff] }
  0xcd   :  { %850 = vmatpush1.xpose.msra.mxu1 %v815_v60  ;;  %v624_v30 = vadd.f32 %v616_v5, %v3369_v49  ;;  %v1118_v39 = vadd.f32 %v1110_v58, %v4125_v45  ;;  %v928_v12 = vmul.f32 %v4126_v21, %v4116_v51  ;;  %v952_v25 = vmul.f32 %v4129_v56, %v4128_v54  ;;  %v4135_v60 = vld [vmem:[#allocation43_spill] sm:$0xff]  ;;  %v4141_v61 = vld [vmem:[#allocation29_spill] sm:$0xff] }
  0xce   :  { %669 = vmatpush1.xpose.msra.mxu0 %v634_v35  ;;  %851 = vmatprep.subr.mxu1 %v814_v27  ;;  %v797_v50 = vadd.f32 %v789_v55, %v773_v9  ;;  %v961_v6 = vadd.f32 %v4127_v2, %v937_v53  ;;  %v976_v31 = vmul.f32 %v4131_v19, %v4118_v10  ;;  %v4136_v55 = vld [vmem:[#allocation72_spill] sm:$0xff]  ;;  %v4139_v27 = vld [vmem:[#allocation67_spill] sm:$0xff]  ;;  %v4140_v9 = vld [vmem:[#allocation69_spill] sm:$0xff] }
  0xcf   :  { %670 = vmatprep.subr.mxu0 %v633_v63  ;;  %v632_v29 = vmax.f32 %v624_v30, 0.0  ;;  %v1142_v41 = vadd.f32 %v4130_v22, %v1118_v39  ;;  %v936_v33 = vadd.f32 %v928_v12, %v912_v42  ;;  %v1093_v35 = vmul.f32 %v4132_v28, %v4123_v8  ;;  %v4142_v45 = vld [vmem:[#allocation71_spill] sm:$0xff]  ;;  %v4143_v12 = vld [vmem:[#allocation30_spill] sm:$0xff] }
  0xd0   :  { %v805_v62 = vadd.f32 %v797_v50, %v3369_v49  ;;  %v985_v37 = vadd.f32 %v977_v4, %v961_v6  ;;  %v1109_v48 = vmul.f32 %v4133_v46, %v4116_v51  ;;  %v1133_v1 = vmul.f32 %v4134_v7, %v4128_v54 }
  0xd1   :  { %v1166_v57 = vadd.f32 %v1158_v24, %v1142_v41  ;;  %v960_v38 = vadd.f32 %v952_v25, %v936_v33  ;;  %v1157_v11 = vmul.f32 %v4135_v60, %v4118_v10  ;;  %v911_v5 = vmul.f32 %v4138_v16, %v4137_v3  ;;  %v4144_v41 = vld [vmem:[#allocation31_spill] sm:$0xff] }
  0xd2   :  { %671 = vmatpush1.xpose.msra.mxu0 %v632_v29  ;;  %v813_v26 = vmax.f32 %v805_v62, 0.0  ;;  %v993_v63 = vadd.f32 %v985_v37, %v4136_v55  ;;  %v1117_v18 = vadd.f32 %v1109_v48, %v1093_v35  ;;  %v927_v24 = vmul.f32 %v4117_v32, %v4139_v27 }
  0xd3   :  { %v1174_v4 = vadd.f32 %v1166_v57, %v4136_v55  ;;  %v984_v58 = vadd.f32 %v976_v31, %v960_v38  ;;  %v951_v53 = vmul.f32 %v4141_v61, %v4140_v9  ;;  %v975_v39 = vmul.f32 %v4119_v34, %v4142_v45 }
  0xd4   :  { %852 = vmatpush1.xpose.msra.mxu1 %v813_v26  ;;  %v1001_v42 = vmax.f32 %v993_v63, 0.0  ;;  %v1141_v30 = vadd.f32 %v1133_v1, %v1117_v18  ;;  %v1092_v50 = vmul.f32 %v4143_v12, %v4137_v3  ;;  %v935_v25 = vadd.f32 %v927_v24, %v911_v5 }
  0xd5   :  { %705 = vmatmul.mubr.f32.vlgmr.msra.gmra.mxu0 %v4114_v15  ;;  %v1182_v2 = vmax.f32 %v1174_v4, 0.0  ;;  %v992_v6 = vadd.f32 %v984_v58, %v4136_v55  ;;  %v1108_v29 = vmul.f32 %v4120_v36, %v4139_v27  ;;  %v1132_v33 = vmul.f32 %v4144_v41, %v4140_v9 }
  0xd6   :  { %1066 = vmatprep.mubr.f32.mxu0 %v4114_v15  ;;  %1026 = vmatprep.subr.mxu0 %v1001_v42  ;;  %v1165_v22 = vadd.f32 %v1157_v11, %v1141_v30  ;;  %v1156_v31 = vmul.f32 %v4121_v0, %v4142_v45  ;;  %v910_v62 = vmul.f32 %v4124_v59, %v4137_v3  ;;  %v4145_v42 = vld [vmem:[#allocation9_spill] sm:$0xff] }
  0xd7   :  { %1207 = vmatprep.subr.mxu1 %v1182_v2  ;;  %886 = vmatmul.mubr.f32.vlgmr.msra.gmra.mxu1 %v4114_v15  ;;  %v1000_v37 = vmax.f32 %v992_v6, 0.0  ;;  %v959_v35 = vadd.f32 %v951_v53, %v935_v25  ;;  %v1116_v48 = vadd.f32 %v1108_v29, %v1092_v50  ;;  %v926_v57 = vmul.f32 %v4126_v21, %v4139_v27  ;;  %v4146_v30 = vld [vmem:[#allocation37_spill] sm:$0xff] }
  0xd8   :  { %v1173_v38 = vadd.f32 %v1165_v22, %v4136_v55  ;;  %v950_v1 = vmul.f32 %v4129_v56, %v4140_v9  ;;  %v974_v11 = vmul.f32 %v4131_v19, %v4142_v45  ;;  %v1091_v26 = vmul.f32 %v4132_v28, %v4137_v3  ;;  %1247 = vmatprep.mubr.f32.mxu1 %v4114_v15 }
  0xd9   :  { %1027 = vmatpush1.xpose.msra.mxu0 %v1000_v37  ;;  %v983_v63 = vadd.f32 %v975_v39, %v959_v35  ;;  %v1140_v18 = vadd.f32 %v1132_v33, %v1116_v48  ;;  %v934_v5 = vadd.f32 %v926_v57, %v910_v62  ;;  %v1107_v4 = vmul.f32 %v4133_v46, %v4139_v27 }
  0xda   :  { %v1181_v58 = vmax.f32 %v1173_v38, 0.0  ;;  %v1131_v24 = vmul.f32 %v4134_v7, %v4140_v9  ;;  %v1155_v53 = vmul.f32 %v4135_v60, %v4142_v45  ;;  %v3531_v50 = vrot.slane %v4146_v30, %v4145_v42 }
  0xdb   :  { %v991_v2 = vadd.f32 %v983_v63, %v3314_v52  ;;  %v1164_v6 = vadd.f32 %v1156_v31, %v1140_v18  ;;  %v958_v39 = vadd.f32 %v950_v1, %v934_v5  ;;  %v1115_v25 = vadd.f32 %v1107_v4, %v1091_v26 }
  0xdc   :  { %1208 = vmatpush1.xpose.msra.mxu1 %v1181_v58  ;;  %v909_v29 = vmul.f32 %v4138_v16, %v3152_v44  ;;  %v925_v22 = vmul.f32 %v4117_v32, %v3074_v14  ;;  %v949_v33 = vmul.f32 %v4141_v61, %v4103_v17  ;;  %v973_v62 = vmul.f32 %v4119_v34, %v3182_v23 }
  0xdd   :  { %v999_v37 = vmax.f32 %v991_v2, 0.0  ;;  %v1172_v35 = vadd.f32 %v1164_v6, %v3314_v52  ;;  %v982_v48 = vadd.f32 %v974_v11, %v958_v39  ;;  %v1139_v31 = vadd.f32 %v1131_v24, %v1115_v25 }
  0xde   :  { %v933_v57 = vadd.f32 %v925_v22, %v909_v29  ;;  %v1090_v38 = vmul.f32 %v4143_v12, %v3152_v44  ;;  %v1106_v1 = vmul.f32 %v4120_v36, %v3074_v14  ;;  %v1130_v26 = vmul.f32 %v4144_v41, %v4103_v17 }
  0xdf   :  { %1028 = vmatprep.subr.mxu0 %v999_v37  ;;  %v1180_v63 = vmax.f32 %v1172_v35, 0.0  ;;  %v990_v18 = vadd.f32 %v982_v48, %v3314_v52  ;;  %v1163_v5 = vadd.f32 %v1155_v53, %v1139_v31  ;;  %v1154_v4 = vmul.f32 %v4121_v0, %v3182_v23 }
  0xe0   :  { %v957_v11 = vadd.f32 %v949_v33, %v933_v57  ;;  %v1114_v58 = vadd.f32 %v1106_v1, %v1090_v38  ;;  %v908_v24 = vmul.f32 %v4124_v59, %v3152_v44  ;;  %v924_v42 = vmul.f32 %v4126_v21, %v3074_v14 }
  0xe1   :  { %1209 = vmatprep.subr.mxu1 %v1180_v63  ;;  %v998_v30 = vmax.f32 %v990_v18, 0.0  ;;  %v1171_v2 = vadd.f32 %v1163_v5, %v3314_v52  ;;  %v948_v6 = vmul.f32 %v4129_v56, %v4103_v17  ;;  %v972_v53 = vmul.f32 %v4131_v19, %v3182_v23 }
  0xe2   :  { %v981_v39 = vadd.f32 %v973_v62, %v957_v11  ;;  %v1138_v25 = vadd.f32 %v1130_v26, %v1114_v58  ;;  %v932_v29 = vadd.f32 %v924_v42, %v908_v24  ;;  %v1089_v22 = vmul.f32 %v4132_v28, %v3152_v44 }
  0xe3   :  { %1029 = vmatpush1.xpose.msra.mxu0 %v998_v30  ;;  %v1179_v33 = vmax.f32 %v1171_v2, 0.0  ;;  %v1105_v37 = vmul.f32 %v4133_v46, %v3074_v14  ;;  %v1129_v35 = vmul.f32 %v4134_v7, %v4103_v17  ;;  %v1153_v48 = vmul.f32 %v4135_v60, %v3182_v23 }
  0xe4   :  { %v989_v31 = vadd.f32 %v981_v39, %v3362_v40  ;;  %v1162_v57 = vadd.f32 %v1154_v4, %v1138_v25  ;;  %v956_v62 = vadd.f32 %v948_v6, %v932_v29  ;;  %v907_v38 = vmul.f32 %v4138_v16, %v3244_v43 }
  0xe5   :  { %1210 = vmatpush1.xpose.msra.mxu1 %v1179_v33  ;;  %v1113_v1 = vadd.f32 %v1105_v37, %v1089_v22  ;;  %v923_v26 = vmul.f32 %v4117_v32, %v4109_v13  ;;  %v947_v63 = vmul.f32 %v4141_v61, %v3339_v20  ;;  %v971_v18 = vmul.f32 %v4119_v34, %v4110_v47 }
  0xe6   :  { %v997_v5 = vmax.f32 %v989_v31, 0.0  ;;  %v1170_v11 = vadd.f32 %v1162_v57, %v3362_v40  ;;  %v980_v58 = vadd.f32 %v972_v53, %v956_v62  ;;  %v1088_v4 = vmul.f32 %v4143_v12, %v3244_v43 }
  0xe7   :  { %v1137_v24 = vadd.f32 %v1129_v35, %v1113_v1  ;;  %v931_v16 = vadd.f32 %v923_v26, %v907_v38  ;;  %v1104_v42 = vmul.f32 %v4120_v36, %v4109_v13  ;;  %v1128_v32 = vmul.f32 %v4144_v41, %v3339_v20  ;;  %v4148_v38 = vld [vmem:[#allocation46_spill] sm:$0xff] }
  0xe8   :  { %1030 = vmatprep.subr.mxu0 %v997_v5  ;;  %v1178_v61 = vmax.f32 %v1170_v11, 0.0  ;;  %v988_v30 = vadd.f32 %v980_v58, %v3362_v40  ;;  %v1152_v34 = vmul.f32 %v4121_v0, %v4110_v47  ;;  %v906_v2 = vmul.f32 %v4124_v59, %v3244_v43  ;;  %v4151_v11 = vld [vmem:[#allocation47_spill] sm:$0xff] }
  0xe9   :  { %v1161_v6 = vadd.f32 %v1153_v48, %v1137_v24  ;;  %v955_v12 = vadd.f32 %v947_v63, %v931_v16  ;;  %v1112_v53 = vadd.f32 %v1104_v42, %v1088_v4  ;;  %v922_v39 = vmul.f32 %v4126_v21, %v4109_v13  ;;  %v4152_v16 = vld [vmem:[#allocation52_spill] sm:$0xff] }
  0xea   :  { %1211 = vmatprep.subr.mxu1 %v1178_v61  ;;  %v996_v36 = vmax.f32 %v988_v30, 0.0  ;;  %v946_v41 = vmul.f32 %v4129_v56, %v3339_v20  ;;  %v970_v25 = vmul.f32 %v4131_v19, %v4110_v47  ;;  %v1087_v0 = vmul.f32 %v4132_v28, %v3244_v43  ;;  %v4147_v19 = vld [vmem:[#allocation44_spill] sm:$0xff] }
  0xeb   :  { %v1169_v29 = vadd.f32 %v1161_v6, %v3362_v40  ;;  %v979_v59 = vadd.f32 %v971_v18, %v955_v12  ;;  %v1136_v22 = vadd.f32 %v1128_v32, %v1112_v53  ;;  %v930_v33 = vadd.f32 %v922_v39, %v906_v2  ;;  %v4153_v32 = vld [vmem:[#allocation48_spill] sm:$0xff]  ;;  %v4154_v2 = vld [vmem:[#allocation57_spill] sm:$0xff] }
  0xec   :  { %1031 = vmatpush1.xpose.msra.mxu0 %v996_v36  ;;  %v1103_v21 = vmul.f32 %v4133_v46, %v4109_v13  ;;  %v1127_v37 = vmul.f32 %v4134_v7, %v3339_v20  ;;  %v1151_v56 = vmul.f32 %v4135_v60, %v4110_v47  ;;  %v1275_v35 = vmul.f32 %v4147_v19, %v4123_v8  ;;  %v4149_v46 = vld [vmem:[#allocation45_spill] sm:$0xff]  ;;  %v4150_v7 = vld [vmem:[#allocation56_spill] sm:$0xff] }
  0xed   :  { %v1177_v48 = vmax.f32 %v1169_v29, 0.0  ;;  %v987_v28 = vadd.f32 %v979_v59, %v3369_v49  ;;  %v1160_v31 = vadd.f32 %v1152_v34, %v1136_v22  ;;  %v954_v57 = vadd.f32 %v946_v41, %v930_v33  ;;  %v4155_v12 = vld [vmem:[#allocation53_spill] sm:$0xff]  ;;  %v4158_v33 = vld [vmem:[#allocation60_spill] sm:$0xff] }
  0xee   :  { %v1111_v62 = vadd.f32 %v1103_v21, %v1087_v0  ;;  %v1291_v1 = vmul.f32 %v4148_v38, %v4116_v51  ;;  %v1315_v26 = vmul.f32 %v4149_v46, %v4128_v54  ;;  %v1339_v63 = vmul.f32 %v4150_v7, %v4118_v10  ;;  %v4157_v59 = vld [vmem:[#allocation49_spill] sm:$0xff] }
  0xef   :  { %1212 = vmatpush1.xpose.msra.mxu1 %v1177_v48  ;;  %v995_v60 = vmax.f32 %v987_v28, 0.0  ;;  %v1168_v18 = vadd.f32 %v1160_v31, %v3369_v49  ;;  %v978_v5 = vadd.f32 %v970_v25, %v954_v57  ;;  %v1456_v58 = vmul.f32 %v4151_v11, %v4123_v8  ;;  %v4156_v25 = vld [vmem:[#allocation54_spill] sm:$0xff]  ;;  %v4160_v57 = vld [vmem:[#allocation59_spill] sm:$0xff] }
  0xf0   :  { %v1135_v4 = vadd.f32 %v1127_v37, %v1111_v62  ;;  %v1299_v24 = vadd.f32 %v1291_v1, %v1275_v35  ;;  %v1472_v42 = vmul.f32 %v4152_v16, %v4116_v51  ;;  %v1496_v61 = vmul.f32 %v4153_v32, %v4128_v54  ;;  %v4159_v37 = vld [vmem:[#allocation58_spill] sm:$0xff]  ;;  %v4161_v1 = vld [vmem:[#allocation55_spill] sm:$0xff] }
  0xf1   :  { %1032 = vmatprep.subr.mxu0 %v995_v60  ;;  %v1176_v30 = vmax.f32 %v1168_v18, 0.0  ;;  %v986_v34 = vadd.f32 %v978_v5, %v3369_v49  ;;  %v1520_v6 = vmul.f32 %v4154_v2, %v4118_v10  ;;  %v1274_v53 = vmul.f32 %v4155_v12, %v4123_v8 }
  0xf2   :  { %v1159_v39 = vadd.f32 %v1151_v56, %v1135_v4  ;;  %v1323_v36 = vadd.f32 %v1315_v26, %v1299_v24  ;;  %v1480_v41 = vadd.f32 %v1472_v42, %v1456_v58  ;;  %v1290_v0 = vmul.f32 %v4156_v25, %v4116_v51 }
  0xf3   :  { %1213 = vmatprep.subr.mxu1 %v1176_v30  ;;  %v994_v29 = vmax.f32 %v986_v34, 0.0  ;;  %v1314_v22 = vmul.f32 %v4157_v59, %v4128_v54  ;;  %v1338_v21 = vmul.f32 %v4158_v33, %v4118_v10  ;;  %v1455_v35 = vmul.f32 %v4159_v37, %v4123_v8 }
  0xf4   :  { %v1167_v48 = vadd.f32 %v1159_v39, %v3369_v49  ;;  %v1347_v28 = vadd.f32 %v1339_v63, %v1323_v36  ;;  %v1504_v56 = vadd.f32 %v1496_v61, %v1480_v41  ;;  %v1298_v31 = vadd.f32 %v1290_v0, %v1274_v53 }
  0xf5   :  { %1033 = vmatpush1.xpose.msra.mxu0 %v994_v29  ;;  %v1471_v62 = vmul.f32 %v4160_v57, %v4116_v51  ;;  %v1495_v26 = vmul.f32 %v4161_v1, %v4128_v54  ;;  %v1519_v60 = vmul.f32 %v3531_v50, %v4118_v10  ;;  %v1273_v18 = vmul.f32 %v4147_v19, %v4137_v3 }
  0xf6   :  { %v1175_v5 = vmax.f32 %v1167_v48, 0.0  ;;  %v1355_v8 = vadd.f32 %v1347_v28, %v4136_v55  ;;  %v1528_v58 = vadd.f32 %v1520_v6, %v1504_v56  ;;  %v1322_v63 = vadd.f32 %v1314_v22, %v1298_v31 }
  0xf7   :  { %v1479_v4 = vadd.f32 %v1471_v62, %v1455_v35  ;;  %v1289_v24 = vmul.f32 %v4148_v38, %v4139_v27  ;;  %v1313_v51 = vmul.f32 %v4149_v46, %v4140_v9  ;;  %v1337_v54 = vmul.f32 %v4150_v7, %v4142_v45 }
  0xf8   :  { %1214 = vmatpush1.xpose.msra.mxu1 %v1175_v5  ;;  %v1363_v10 = vmax.f32 %v1355_v8, 0.0  ;;  %v1536_v42 = vadd.f32 %v1528_v58, %v4136_v55  ;;  %1067 = vmatmul.mubr.f32.vlgmr.msra.gmra.mxu0 %v4114_v15  ;;  %v1346_v61 = vadd.f32 %v1338_v21, %v1322_v63  ;;  %v1454_v30 = vmul.f32 %v4151_v11, %v4137_v3 }
  0xf9   :  { %v1503_v34 = vadd.f32 %v1495_v26, %v1479_v4  ;;  %v1297_v6 = vadd.f32 %v1289_v24, %v1273_v18  ;;  %v1470_v53 = vmul.f32 %v4152_v16, %v4139_v27  ;;  %v1494_v39 = vmul.f32 %v4153_v32, %v4140_v9  ;;  %1428 = vmatprep.mubr.f32.mxu0 %v4114_v15 }
  0xfa   :  { %1388 = vmatprep.subr.mxu0 %v1363_v10  ;;  %v1544_v36 = vmax.f32 %v1536_v42, 0.0  ;;  %v1354_v41 = vadd.f32 %v1346_v61, %v4136_v55  ;;  %v1518_v0 = vmul.f32 %v4154_v2, %v4142_v45  ;;  %v1272_v29 = vmul.f32 %v4155_v12, %v4137_v3 }
  0xfb   :  { %1248 = vmatmul.mubr.f32.vlgmr.msra.gmra.mxu1 %v4114_v15  ;;  %v1527_v22 = vadd.f32 %v1519_v60, %v1503_v34  ;;  %v1321_v21 = vadd.f32 %v1313_v51, %v1297_v6  ;;  %v1478_v35 = vadd.f32 %v1470_v53, %v1454_v30  ;;  %v1288_v48 = vmul.f32 %v4156_v25, %v4139_v27 }
  0xfc   :  { %1569 = vmatprep.subr.mxu1 %v1544_v36  ;;  %v1362_v28 = vmax.f32 %v1354_v41, 0.0  ;;  %v1312_v56 = vmul.f32 %v4157_v59, %v4140_v9  ;;  %v1336_v31 = vmul.f32 %v4158_v33, %v4142_v45  ;;  %v1453_v62 = vmul.f32 %v4159_v37, %v4137_v3  ;;  %1609 = vmatprep.mubr.f32.mxu1 %v4114_v15 }
  0xfd   :  { %v1535_v26 = vadd.f32 %v1527_v22, %v4136_v55  ;;  %v1345_v60 = vadd.f32 %v1337_v54, %v1321_v21  ;;  %v1502_v18 = vadd.f32 %v1494_v39, %v1478_v35  ;;  %v1296_v5 = vadd.f32 %v1288_v48, %v1272_v29 }
  0xfe   :  { %1389 = vmatpush1.xpose.msra.mxu0 %v1362_v28  ;;  %v1469_v8 = vmul.f32 %v4160_v57, %v4139_v27  ;;  %v1493_v58 = vmul.f32 %v4161_v1, %v4140_v9  ;;  %v1517_v63 = vmul.f32 %v3531_v50, %v4142_v45  ;;  %v1271_v3 = vmul.f32 %v4147_v19, %v3152_v44 }
  0xff   :  { %v1543_v4 = vmax.f32 %v1535_v26, 0.0  ;;  %v1353_v24 = vadd.f32 %v1345_v60, %v3314_v52  ;;  %v1526_v55 = vadd.f32 %v1518_v0, %v1502_v18  ;;  %v1320_v51 = vadd.f32 %v1312_v56, %v1296_v5 }
 0x100   :  { %v1477_v54 = vadd.f32 %v1469_v8, %v1453_v62  ;;  %v1287_v10 = vmul.f32 %v4148_v38, %v3074_v14  ;;  %v1311_v27 = vmul.f32 %v4149_v46, %v4103_v17  ;;  %v1335_v9 = vmul.f32 %v4150_v7, %v3182_v23 }
 0x101   :  { %1570 = vmatpush1.xpose.msra.mxu1 %v1543_v4  ;;  %v1361_v45 = vmax.f32 %v1353_v24, 0.0  ;;  %v1534_v42 = vadd.f32 %v1526_v55, %v3314_v52  ;;  %v1344_v61 = vadd.f32 %v1336_v31, %v1320_v51  ;;  %v1452_v30 = vmul.f32 %v4151_v11, %v3152_v44 }
 0x102   :  { %v1501_v34 = vadd.f32 %v1493_v58, %v1477_v54  ;;  %v1295_v6 = vadd.f32 %v1287_v10, %v1271_v3  ;;  %v1468_v53 = vmul.f32 %v4152_v16, %v3074_v14  ;;  %v1492_v39 = vmul.f32 %v4153_v32, %v4103_v17 }
 0x103   :  { %1390 = vmatprep.subr.mxu0 %v1361_v45  ;;  %v1542_v36 = vmax.f32 %v1534_v42, 0.0  ;;  %v1352_v41 = vadd.f32 %v1344_v61, %v3314_v52  ;;  %v1516_v0 = vmul.f32 %v4154_v2, %v3182_v23  ;;  %v1270_v29 = vmul.f32 %v4155_v12, %v3152_v44 }
 0x104   :  { %v1525_v22 = vadd.f32 %v1517_v63, %v1501_v34  ;;  %v1319_v21 = vadd.f32 %v1311_v27, %v1295_v6  ;;  %v1476_v35 = vadd.f32 %v1468_v53, %v1452_v30  ;;  %v1286_v48 = vmul.f32 %v4156_v25, %v3074_v14 }
 0x105   :  { %1571 = vmatprep.subr.mxu1 %v1542_v36  ;;  %v1360_v28 = vmax.f32 %v1352_v41, 0.0  ;;  %v1310_v56 = vmul.f32 %v4157_v59, %v4103_v17  ;;  %v1334_v31 = vmul.f32 %v4158_v33, %v3182_v23  ;;  %v1451_v62 = vmul.f32 %v4159_v37, %v3152_v44 }
 0x106   :  { %v1533_v26 = vadd.f32 %v1525_v22, %v3314_v52  ;;  %v1343_v60 = vadd.f32 %v1335_v9, %v1319_v21  ;;  %v1500_v18 = vadd.f32 %v1492_v39, %v1476_v35  ;;  %v1294_v5 = vadd.f32 %v1286_v48, %v1270_v29 }
 0x107   :  { %1391 = vmatpush1.xpose.msra.mxu0 %v1360_v28  ;;  %v1467_v8 = vmul.f32 %v4160_v57, %v3074_v14  ;;  %v1491_v58 = vmul.f32 %v4161_v1, %v4103_v17  ;;  %v1515_v63 = vmul.f32 %v3531_v50, %v3182_v23  ;;  %v1269_v52 = vmul.f32 %v4147_v19, %v3244_v43 }
 0x108   :  { %v1541_v3 = vmax.f32 %v1533_v26, 0.0  ;;  %v1351_v4 = vadd.f32 %v1343_v60, %v3362_v40  ;;  %v1524_v24 = vadd.f32 %v1516_v0, %v1500_v18  ;;  %v1318_v44 = vadd.f32 %v1310_v56, %v1294_v5 }
 0x109   :  { %v1475_v55 = vadd.f32 %v1467_v8, %v1451_v62  ;;  %v1285_v51 = vmul.f32 %v4148_v38, %v4109_v13  ;;  %v1309_v14 = vmul.f32 %v4149_v46, %v3339_v20  ;;  %v1450_v10 = vmul.f32 %v4151_v11, %v3244_v43 }
 0x10a   :  { %1572 = vmatpush1.xpose.msra.mxu1 %v1541_v3  ;;  %v1359_v17 = vmax.f32 %v1351_v4, 0.0  ;;  %v1532_v54 = vadd.f32 %v1524_v24, %v3362_v40  ;;  %v1342_v23 = vadd.f32 %v1334_v31, %v1318_v44  ;;  %v1466_v45 = vmul.f32 %v4152_v16, %v4109_v13 }
 0x10b   :  { %v1499_v27 = vadd.f32 %v1491_v58, %v1475_v55  ;;  %v1293_v9 = vadd.f32 %v1285_v51, %v1269_v52  ;;  %v1490_v19 = vmul.f32 %v4153_v32, %v3339_v20  ;;  %v1333_v42 = vmul.f32 %v4150_v7, %v4110_v47  ;;  %v4163_v58 = vld [vmem:[#allocation8_spill] sm:$0xff] }
 0x10c   :  { %1392 = vmatprep.subr.mxu0 %v1359_v17  ;;  %v1540_v38 = vmax.f32 %v1532_v54, 0.0  ;;  %v1350_v46 = vadd.f32 %v1342_v23, %v3362_v40  ;;  %v1268_v61 = vmul.f32 %v4155_v12, %v3244_v43  ;;  %v1474_v34 = vadd.f32 %v1466_v45, %v1450_v10 }
 0x10d   :  { %v1523_v30 = vadd.f32 %v1515_v63, %v1499_v27  ;;  %v1317_v11 = vadd.f32 %v1309_v14, %v1293_v9  ;;  %v1284_v6 = vmul.f32 %v4156_v25, %v4109_v13  ;;  %v1514_v32 = vmul.f32 %v4154_v2, %v4110_v47 }
 0x10e   :  { %1573 = vmatprep.subr.mxu1 %v1540_v38  ;;  %v1358_v16 = vmax.f32 %v1350_v46, 0.0  ;;  %v1308_v53 = vmul.f32 %v4157_v59, %v3339_v20  ;;  %v1498_v36 = vadd.f32 %v1490_v19, %v1474_v34  ;;  %v1332_v12 = vmul.f32 %v4158_v33, %v4110_v47 }
 0x10f   :  { %v1531_v39 = vadd.f32 %v1523_v30, %v3362_v40  ;;  %v1341_v7 = vadd.f32 %v1333_v42, %v1317_v11  ;;  %v1292_v41 = vadd.f32 %v1284_v6, %v1268_v61  ;;  %v1449_v25 = vmul.f32 %v4159_v37, %v3244_v43 }
 0x110   :  { %1393 = vmatpush1.xpose.msra.mxu0 %v1358_v16  ;;  %v1465_v0 = vmul.f32 %v4160_v57, %v4109_v13  ;;  %v1489_v2 = vmul.f32 %v4161_v1, %v3339_v20  ;;  %v1522_v40 = vadd.f32 %v1514_v32, %v1498_v36  ;;  %v1513_v43 = vmul.f32 %v3531_v50, %v4110_v47  ;;  %v1625_v47 = vld [vmem:[%s3918_s3] sm:$0xff]  ;;  %v4162_v50 = vld [vmem:[#allocation7_spill] sm:$0xff] }
 0x111   :  { %v1539_v29 = vmax.f32 %v1531_v39, 0.0  ;;  %v1349_v59 = vadd.f32 %v1341_v7, %v3369_v49  ;;  %v1316_v22 = vadd.f32 %v1308_v53, %v1292_v41  ;;  %vm51_vm1 = vcmp.eq.s32.totalorder %v4162_v50, 0 }
 0x112   :  { %v1473_v21 = vadd.f32 %v1465_v0, %v1449_v25  ;;  %v1530_v48 = vadd.f32 %v1522_v40, %v3369_v49  ;;  %vm54_vm2 = vcmp.eq.s32.totalorder %v4162_v50, 1  ;;  %v2590_v60 = vmov 0.0  }
 0x113   :  { %1574 = vmatpush1.xpose.msra.mxu1 %v1539_v29  ;;  %v1357_v35 = vmax.f32 %v1349_v59, 0.0  ;;  %v1340_v33 = vadd.f32 %v1332_v12, %v1316_v22  ;;  %v2348_v18 = vsel %vm51_vm1, 1.0, %v2590_v60  ;;  %vm57_vm3 = vcmp.eq.s32.totalorder %v4162_v50, 2 }
 0x114   :  { %v1497_v28 = vadd.f32 %v1489_v2, %v1473_v21  ;;  %v1538_v13 = vmax.f32 %v1530_v48, 0.0  ;;  %v2350_v51 = vsel %vm57_vm3, 1.0, %v2590_v60  ;;  %vm60_vm4 = vcmp.eq.s32.totalorder %v4162_v50, 3 }
 0x115   :  { %1394 = vmatprep.subr.mxu0 %v1357_v35  ;;  %v1348_v37 = vadd.f32 %v1340_v33, %v3369_v49  ;;  %v2351_v27 = vsel %vm60_vm4, 1.0, %v2590_v60  ;;  %vm63_vm5 = vcmp.eq.s32.totalorder %v4162_v50, 4  ;;  %vm66_vm6 = vcmp.eq.s32.totalorder %v4162_v50, 5 }
 0x116   :  { %v1521_v20 = vadd.f32 %v1513_v43, %v1497_v28  ;;  %1575 = vmatprep.subr.mxu1 %v1538_v13  ;;  %v2352_v32 = vsel %vm63_vm5, 1.0, %v2590_v60  ;;  %v2353_v7 = vsel %vm66_vm6, 1.0, %v2590_v60  ;;  %vm69_vm7 = vcmp.eq.s32.totalorder %v4162_v50, 6 }
 0x117   :  { %v1356_v57 = vmax.f32 %v1348_v37, 0.0  ;;  %v2354_v0 = vsel %vm69_vm7, 1.0, %v2590_v60  ;;  %vm72_vm8 = vcmp.eq.s32.totalorder %v4162_v50, 7  ;;  %v1631_v50 = vld [vmem:[%s3918_s3 + $0x30] sm:$0xff] }
 0x118   :  { %v1529_v1 = vadd.f32 %v1521_v20, %v3369_v49  ;;  %v2355_v35 = vsel %vm72_vm8, 1.0, %v2590_v60  ;;  %v1626_v20 = vld [vmem:[%s3918_s3 + $0x8] sm:$0xff] }
 0x119   :  { %1395 = vmatpush1.xpose.msra.mxu0 %v1356_v57  ;;  %v1627_v57 = vld [vmem:[%s3918_s3 + $0x10] sm:$0xff] }
 0x11a   :  { %v1537_v56 = vmax.f32 %v1529_v1, 0.0  ;;  %v1628_v1 = vld [vmem:[%s3918_s3 + $0x18] sm:$0xff] }
 0x11c   :  { %1576 = vmatpush1.xpose.msra.mxu1 %v1537_v56  ;;  %1429 = vmatmul.mubr.f32.vlgmr.msra.gmra.mxu0 %v4114_v15  ;;  %v1629_v56 = vld [vmem:[%s3918_s3 + $0x20] sm:$0xff] }
 0x11d   :  { %2438 = vmatprep.mubr.msk.f32.mxu0 %vm1622_vm0, %v1625_v47  ;;  %v1630_v47 = vld [vmem:[%s3918_s3 + $0x28] sm:$0xff] }
 0x11f   :  { %1610 = vmatmul.mubr.f32.vlgmr.msra.gmra.mxu1 %v4114_v15  ;;  %v2349_v15 = vsel %vm54_vm2, 1.0, %v2590_v60 }
 0x184   :  { %v344_v31 = vpop.f32.mrf.mxu0  ;;  %v525_v49 = vpop.f32.mrf.mxu1 }
 0x185   :  { %v348_v62 = vmul.f32 0.00390625, %v344_v31  ;;  %v529_v26 = vmul.f32 0.00390625, %v525_v49  ;;  %v1632_v31 = vld [vmem:[%s3918_s3 + $0x38] sm:$0xff]  ;;  %v1633_v49 = vld [vmem:[%s3918_s3 + $0x40] sm:$0xff] }
 0x186   :  { %v346_v5 = vpop.f32.mrf.mxu0  ;;  %v527_v8 = vpop.f32.mrf.mxu1 }
 0x187   :  { %v352_v63 = vrot.slane %v348_v62, %v4163_v58  ;;  %v533_v3 = vrot.slane %v529_v26, %v4163_v58  ;;  %v1634_v62 = vld [vmem:[%s3918_s3 + $0x48] sm:$0xff]  ;;  %v1635_v26 = vld [vmem:[%s3918_s3 + $0x50] sm:$0xff] }
 0x188   :  { %v1638_v5 = vld [vmem:[%s3918_s3 + $0x68] sm:$0xff]  ;;  %v1639_v8 = vld [vmem:[%s3918_s3 + $0x70] sm:$0xff] }
 0x189   :  { %v353_v4 = vmul.f32 %v2348_v18, %v352_v63  ;;  %v534_v24 = vmul.f32 %v2349_v15, %v533_v3  ;;  %v1636_v18 = vld [vmem:[%s3918_s3 + $0x58] sm:$0xff]  ;;  %v1637_v15 = vld [vmem:[%s3918_s3 + $0x60] sm:$0xff] }
 0x18a   :  { %v1640_v63 = vld [vmem:[%s3918_s3 + $0x78] sm:$0xff]  ;;  %v1949_v3 = vld [vmem:[%s3920_s5] sm:$0xff] }
 0x18b   :  { %v535_v44 = vadd.f32 %v534_v24, %v353_v4  ;;  %2494 = vmatprep.mubr.f32.mxu1 %v1949_v3 }
 0x195   :  { %v706_v55 = vpop.f32.mrf.mxu0 }
 0x196   :  { %v710_v52 = vmul.f32 0.00390625, %v706_v55 }
 0x197   :  { %v708_v14 = vpop.f32.mrf.mxu0  ;;  %v887_v54 = vpop.f32.mrf.mxu1 }
 0x198   :  { %v714_v17 = vrot.slane %v710_v52, %v4163_v58  ;;  %v891_v23 = vmul.f32 0.00390625, %v887_v54  ;;  %v1735_v52 = vpop.permute.xlu1 %1734 }
 0x199   :  { %v889_v9 = vpop.f32.mrf.mxu1 }
 0x19a   :  { %v715_v10 = vmul.f32 %v2350_v51, %v714_v17  ;;  %v895_v45 = vrot.slane %v891_v23, %v4163_v58 }
 0x19c   :  { %v716_v19 = vadd.f32 %v715_v10, %v535_v44  ;;  %v896_v38 = vmul.f32 %v2351_v27, %v895_v45  ;;  %v1730_v54 = vpop.permute.xlu1 %1729  ;;  %v1725_v27 = vpop.permute.xlu0 %1724 }
 0x19e   :  { %v897_v46 = vadd.f32 %v896_v38, %v716_v19 }
 0x1a0   :  { %v1720_v45 = vpop.permute.xlu1 %1719 }
 0x1b8   :  { %v1068_v42 = vpop.f32.mrf.mxu0 }
 0x1b9   :  { %v1072_v34 = vmul.f32 0.00390625, %v1068_v42 }
 0x1ba   :  { %v1070_v61 = vpop.f32.mrf.mxu0 }
 0x1bb   :  { %v1249_v30 = vpop.f32.mrf.mxu1  ;;  %v1076_v6 = vrot.slane %v1072_v34, %v4163_v58  ;;  %v1710_v61 = vpop.permute.xlu1 %1709 }
 0x1bc   :  { %v1253_v16 = vmul.f32 0.00390625, %v1249_v30 }
 0x1bd   :  { %v1251_v11 = vpop.f32.mrf.mxu1  ;;  %v1077_v53 = vmul.f32 %v2352_v32, %v1076_v6 }
 0x1be   :  { %v1257_v39 = vrot.slane %v1253_v16, %v4163_v58 }
 0x1bf   :  { %v1078_v41 = vadd.f32 %v1077_v53, %v897_v46  ;;  %v1715_v46 = vpop.permute.xlu0 %1714 }
 0x1c0   :  { %v1258_v12 = vmul.f32 %v2353_v7, %v1257_v39  ;;  %v1700_v7 = vpop.permute.xlu1 %1699 }
 0x1c2   :  { %v1259_v22 = vadd.f32 %v1258_v12, %v1078_v41 }
 0x1c3   :  { %v1705_v6 = vpop.permute.xlu0 %1704 }
 0x1dc   :  { %v1430_v36 = vpop.f32.mrf.mxu0 }
 0x1dd   :  { %v1434_v25 = vmul.f32 0.00390625, %v1430_v36 }
 0x1de   :  { %v1432_v2 = vpop.f32.mrf.mxu0 }
 0x1df   :  { %v1438_v29 = vrot.slane %v1434_v25, %v4163_v58  ;;  %v1611_v59 = vpop.f32.mrf.mxu1 }
 0x1e0   :  { %v1615_v40 = vmul.f32 0.00390625, %v1611_v59  ;;  %v1690_v59 = vpop.permute.xlu1 %1689 }
 0x1e1   :  { %v1439_v21 = vmul.f32 %v2354_v0, %v1438_v29  ;;  %v1613_v48 = vpop.f32.mrf.mxu1  ;;  %v1695_v0 = vpop.permute.xlu0 %1694 }
 0x1e2   :  { %v1619_v33 = vrot.slane %v1615_v40, %v4163_v58 }
 0x1e3   :  { %v1440_v28 = vadd.f32 %v1439_v21, %v1259_v22 }
 0x1e4   :  { %v1620_v43 = vmul.f32 %v2355_v35, %v1619_v33 }
 0x1e5   :  { %v1685_v48 = vpop.permute.xlu0 %1684 }
 0x1e6   :  { %v1621_v13 = vadd.f32 %v1620_v43, %v1440_v28  ;;  %v1680_v43 = vpop.permute.xlu1 %1679 }
 0x1e8   :  { %1623 = vst.msk [vmem:[#allocation2] sm:$0xff] %vm1622_vm0, %v1621_v13 }
 0x1ef   :  { %v1624_v37 = vld [vmem:[#allocation2] sm:$0xff] }
 0x1f0   :  { %2436 = vmatprep.subr.msk.mxu0 %vm1622_vm0, %v1624_v37 }
 0x1f1   :  { %2437 = vmatpush3.xpose.msk.msra.mxu0 %vm1622_vm0, %v1624_v37 }
 0x1f4   :  { %2439 = vmatmul.mubr.msk.f32.vlgmr.msra.gmra.mxu0 %vm1622_vm0, %v1626_v20 }
 0x1f5   :  { %2441 = vmatprep.mubr.msk.f32.mxu0 %vm1622_vm0, %v1627_v57 }
 0x1f8   :  { %2442 = vmatmul.mubr.msk.f32.gmra.mxu0 %vm1622_vm0, %v1628_v1  ;;  %v1675_v1 = vpop.permute.xlu0 %1674 }
 0x1f9   :  { %2444 = vmatprep.mubr.msk.f32.mxu0 %vm1622_vm0, %v1629_v56 }
 0x1fc   :  { %2445 = vmatmul.mubr.msk.f32.gmra.mxu0 %vm1622_vm0, %v1630_v47 }
 0x1fd   :  { %2447 = vmatprep.mubr.msk.f32.mxu0 %vm1622_vm0, %v1631_v50  ;;  %v1670_v50 = vpop.permute.xlu1 %1669 }
 0x200   :  { %2448 = vmatmul.mubr.msk.f32.gmra.mxu0 %vm1622_vm0, %v1632_v31 }
 0x201   :  { %2450 = vmatprep.mubr.msk.f32.mxu0 %vm1622_vm0, %v1633_v49 }
 0x204   :  { %2451 = vmatmul.mubr.msk.f32.gmra.mxu0 %vm1622_vm0, %v1634_v62 }
 0x205   :  { %2453 = vmatprep.mubr.msk.f32.mxu0 %vm1622_vm0, %v1635_v26 }
 0x208   :  { %2454 = vmatmul.mubr.msk.f32.gmra.mxu0 %vm1622_vm0, %v1636_v18  ;;  %v1665_v18 = vpop.permute.xlu0 %1664 }
 0x209   :  { %2456 = vmatprep.mubr.msk.f32.mxu0 %vm1622_vm0, %v1637_v15 }
 0x20c   :  { %2457 = vmatmul.mubr.msk.f32.gmra.mxu0 %vm1622_vm0, %v1638_v5 }
 0x20d   :  { %2459 = vmatprep.mubr.msk.f32.mxu0 %vm1622_vm0, %v1639_v8  ;;  %v1660_v8 = vpop.permute.xlu1 %1659 }
 0x210   :  { %2460 = vmatmul.mubr.msk.f32.gmra.mxu0 %vm1622_vm0, %v1640_v63 }
 0x2b4   :  { %v3853_v4 = vpop.f32.mrf.mxu0 }
 0x2b5   :  { %v1860_v15 = vadd.f32 %v3853_v4, %v1665_v18  ;;  %v1951_v4 = vld [vmem:[%s3920_s5 + $0x10] sm:$0xff] }
 0x2b6   :  { %v3855_v24 = vpop.f32.mrf.mxu0 }
 0x2b7   :  { %v1855_v63 = vadd.f32 %v3855_v24, %v1660_v8  ;;  %v1952_v24 = vld [vmem:[%s3920_s5 + $0x18] sm:$0xff] }
 0x2b8   :  { %v3857_v44 = vpop.f32.mrf.mxu0 }
 0x2b9   :  { %v1870_v31 = vadd.f32 %v3857_v44, %v1675_v1  ;;  %v1934_v44 = vmax.f32 %v1860_v15, 0.0 }
 0x2ba   :  { %v3859_v55 = vpop.f32.mrf.mxu0 }
 0x2bb   :  { %v1865_v62 = vadd.f32 %v3859_v55, %v1670_v50  ;;  %v1936_v5 = vmax.f32 %v1870_v31, 0.0  ;;  %v1950_v55 = vld [vmem:[%s3920_s5 + $0x8] sm:$0xff] }
 0x2bc   :  { %v2446_v51 = vpop.f32.mrf.mxu0 }
 0x2bd   :  { %v1880_v20 = vadd.f32 %v2446_v51, %v1685_v48  ;;  %v1935_v3 = vmax.f32 %v1865_v62, 0.0  ;;  %v1953_v51 = vld [vmem:[%s3920_s5 + $0x20] sm:$0xff] }
 0x2be   :  { %v1874_v14 = vpop.f32.mrf.mxu0 }
 0x2bf   :  { %v1875_v56 = vadd.f32 %v1874_v14, %v1680_v43  ;;  %v1938_v49 = vmax.f32 %v1880_v20, 0.0  ;;  %v1954_v14 = vld [vmem:[%s3920_s5 + $0x28] sm:$0xff]  ;;  %v2120_v43 = vld [vmem:[%s3922_s7 + $0x10] sm:$0xff] }
 0x2c0   :  { %v2449_v17 = vpop.f32.mrf.mxu0 }
 0x2c1   :  { %v1890_v33 = vadd.f32 %v2449_v17, %v1695_v0  ;;  %v1937_v26 = vmax.f32 %v1875_v56, 0.0  ;;  %v1955_v17 = vld [vmem:[%s3920_s5 + $0x30] sm:$0xff] }
 0x2c2   :  { %v1884_v23 = vpop.f32.mrf.mxu0 }
 0x2c3   :  { %v1885_v13 = vadd.f32 %v1884_v23, %v1690_v59  ;;  %v1940_v57 = vmax.f32 %v1890_v33, 0.0  ;;  %v2118_v23 = vld [vmem:[%s3922_s7] sm:$0xff] }
 0x2c4   :  { %v2452_v10 = vpop.f32.mrf.mxu0  ;;  %2522 = vmatprep.mubr.msk.f32.mxu0 %vm2146_vm9, %v2118_v23 }
 0x2c5   :  { %v1900_v40 = vadd.f32 %v2452_v10, %v1705_v6  ;;  %v1939_v47 = vmax.f32 %v1885_v13, 0.0  ;;  %v2121_v13 = vld [vmem:[%s3922_s7 + $0x18] sm:$0xff] }
 0x2c6   :  { %v1894_v9 = vpop.f32.mrf.mxu0 }
 0x2c7   :  { %v1895_v21 = vadd.f32 %v1894_v9, %v1700_v7  ;;  %v1942_v28 = vmax.f32 %v1900_v40, 0.0  ;;  %v2003_v9 = vpop.permute.xlu0 %2002 }
 0x2c8   :  { %v2455_v19 = vpop.f32.mrf.mxu0 }
 0x2c9   :  { %v1910_v12 = vadd.f32 %v2455_v19, %v1715_v46  ;;  %v1941_v37 = vmax.f32 %v1895_v21, 0.0  ;;  %v1998_v19 = vpop.permute.xlu1 %1997 }
 0x2ca   :  { %v1904_v38 = vpop.f32.mrf.mxu0 }
 0x2cb   :  { %v1905_v2 = vadd.f32 %v1904_v38, %v1710_v61  ;;  %v1944_v22 = vmax.f32 %v1910_v12, 0.0 }
 0x2cc   :  { %v2458_v42 = vpop.f32.mrf.mxu0 }
 0x2cd   :  { %v1920_v32 = vadd.f32 %v2458_v42, %v1725_v27  ;;  %v1943_v35 = vmax.f32 %v1905_v2, 0.0  ;;  %v1993_v42 = vpop.permute.xlu0 %1992 }
 0x2ce   :  { %v1914_v30 = vpop.f32.mrf.mxu0 }
 0x2cf   :  { %v1915_v36 = vadd.f32 %v1914_v30, %v1720_v45  ;;  %v1946_v25 = vmax.f32 %v1920_v32, 0.0  ;;  %v1988_v30 = vpop.permute.xlu1 %1987 }
 0x2d0   :  { %v2461_v11 = vpop.f32.mrf.mxu0 }
 0x2d1   :  { %v1930_v34 = vadd.f32 %v2461_v11, %v1735_v52  ;;  %v1945_v29 = vmax.f32 %v1915_v36, 0.0  ;;  %v1933_v52 = vmax.f32 %v1855_v63, 0.0 }
 0x2d2   :  { %v1924_v16 = vpop.f32.mrf.mxu0 }
 0x2d3   :  { %v1948_v53 = vmax.f32 %v1930_v34, 0.0  ;;  %v1925_v39 = vadd.f32 %v1924_v16, %v1730_v54  ;;  %v1956_v54 = vld [vmem:[%s3920_s5 + $0x38] sm:$0xff] }
 0x2d5   :  { %v1947_v41 = vmax.f32 %v1925_v39, 0.0  ;;  %2462 = vmatprep.subr.mxu1 %v1948_v53  ;;  %v1983_v39 = vpop.permute.xlu0 %1982 }
 0x2d6   :  { %2463 = vmatpush3.msra.mxu1 %v1948_v53 }
 0x2d7   :  { %2464 = vmatprep.subr.mxu1 %v1947_v41 }
 0x2d8   :  { %2465 = vmatpush3.msra.mxu1 %v1947_v41  ;;  %v1978_v41 = vpop.permute.xlu1 %1977 }
 0x2d9   :  { %2466 = vmatprep.subr.mxu1 %v1946_v25 }
 0x2da   :  { %2467 = vmatpush3.msra.mxu1 %v1946_v25 }
 0x2db   :  { %2468 = vmatprep.subr.mxu1 %v1945_v29 }
 0x2dc   :  { %2469 = vmatpush3.msra.mxu1 %v1945_v29  ;;  %v1973_v29 = vpop.permute.xlu0 %1972 }
 0x2dd   :  { %2470 = vmatprep.subr.mxu1 %v1944_v22 }
 0x2de   :  { %2471 = vmatpush3.msra.mxu1 %v1944_v22  ;;  %v1968_v22 = vpop.permute.xlu1 %1967 }
 0x2df   :  { %2472 = vmatprep.subr.mxu1 %v1943_v35 }
 0x2e0   :  { %2473 = vmatpush3.msra.mxu1 %v1943_v35 }
 0x2e1   :  { %2474 = vmatprep.subr.mxu1 %v1942_v28 }
 0x2e2   :  { %2475 = vmatpush3.msra.mxu1 %v1942_v28  ;;  %v2119_v28 = vld [vmem:[%s3922_s7 + $0x8] sm:$0xff] }
 0x2e3   :  { %2476 = vmatprep.subr.mxu1 %v1941_v37 }
 0x2e4   :  { %2477 = vmatpush3.msra.mxu1 %v1941_v37  ;;  %v2144_v37 = vpop.permute.xlu0 %2143 }
 0x2e5   :  { %2478 = vmatprep.subr.mxu1 %v1940_v57 }
 0x2e6   :  { %2479 = vmatpush3.msra.mxu1 %v1940_v57  ;;  %v2139_v57 = vpop.permute.xlu1 %2138 }
 0x2e7   :  { %2480 = vmatprep.subr.mxu1 %v1939_v47 }
 0x2e8   :  { %2481 = vmatpush3.msra.mxu1 %v1939_v47  ;;  %v2134_v50 = vpop.permute.xlu0 %2133 }
 0x2e9   :  { %2482 = vmatprep.subr.mxu1 %v1938_v49 }
 0x2ea   :  { %2483 = vmatpush3.msra.mxu1 %v1938_v49  ;;  %v2129_v18 = vpop.permute.xlu1 %2128 }
 0x2eb   :  { %2484 = vmatprep.subr.mxu1 %v1937_v26 }
 0x2ec   :  { %2485 = vmatpush3.msra.mxu1 %v1937_v26 }
 0x2ed   :  { %2486 = vmatprep.subr.mxu1 %v1936_v5 }
 0x2ee   :  { %2487 = vmatpush3.msra.mxu1 %v1936_v5 }
 0x2ef   :  { %2488 = vmatprep.subr.mxu1 %v1935_v3 }
 0x2f0   :  { %2489 = vmatpush3.msra.mxu1 %v1935_v3  ;;  %v2248_v3 = vld [vmem:[%s3924_s9] sm:$0x1] }
 0x2f1   :  { %2490 = vmatprep.subr.mxu1 %v1934_v44 }
 0x2f2   :  { %2491 = vmatpush3.msra.mxu1 %v1934_v44  ;;  %v2253_v44 = vpop.permute.xlu0 %2252 }
 0x2f3   :  { %2492 = vmatprep.subr.mxu1 %v1933_v52 }
 0x2f4   :  { %2493 = vmatpush3.msra.mxu1 %v1933_v52  ;;  %v2258_v52 = vrot.slane %v2253_v44, %v4163_v58 }
 0x2f5   :  { %2495 = vmatmul.mubr.f32.vlgmr.msra.gmra.mxu1 %v1950_v55 }
 0x2f6   :  { %2497 = vmatprep.mubr.f32.mxu1 %v1951_v4 }
 0x2f9   :  { %2498 = vmatmul.mubr.f32.gmra.mxu1 %v1952_v24 }
 0x2fa   :  { %2500 = vmatprep.mubr.f32.mxu1 %v1953_v51 }
 0x2fd   :  { %2501 = vmatmul.mubr.f32.gmra.mxu1 %v1954_v14 }
 0x2fe   :  { %2503 = vmatprep.mubr.f32.mxu1 %v1955_v17 }
 0x301   :  { %2504 = vmatmul.mubr.f32.gmra.mxu1 %v1956_v54 }
 0x3b5   :  { %v2496_v10 = vpop.f32.mrf.mxu1 }
 0x3b6   :  { %v2077_v59 = vadd.f32 %v2496_v10, %v1973_v29 }
 0x3b7   :  { %v2071_v27 = vpop.f32.mrf.mxu1 }
 0x3b8   :  { %v2072_v21 = vadd.f32 %v2071_v27, %v1968_v22  ;;  %v2111_v48 = vmax.f32 %v2077_v59, 0.0 }
 0x3b9   :  { %v2499_v45 = vpop.f32.mrf.mxu1 }
 0x3ba   :  { %v2087_v12 = vadd.f32 %v2499_v45, %v1983_v39  ;;  %v2110_v33 = vmax.f32 %v2072_v21, 0.0 }
 0x3bb   :  { %v2081_v38 = vpop.f32.mrf.mxu1 }
 0x3bc   :  { %v2082_v0 = vadd.f32 %v2081_v38, %v1978_v41  ;;  %v2113_v40 = vmax.f32 %v2087_v12, 0.0 }
 0x3bd   :  { %v2502_v46 = vpop.f32.mrf.mxu1 }
 0x3be   :  { %v2097_v16 = vadd.f32 %v2502_v46, %v1993_v42  ;;  %v2112_v35 = vmax.f32 %v2082_v0, 0.0 }
 0x3bf   :  { %v2091_v61 = vpop.f32.mrf.mxu1 }
 0x3c0   :  { %v2092_v7 = vadd.f32 %v2091_v61, %v1988_v30  ;;  %v2115_v25 = vmax.f32 %v2097_v16, 0.0 }
 0x3c1   :  { %v2505_v11 = vpop.f32.mrf.mxu1 }
 0x3c2   :  { %v2107_v34 = vadd.f32 %v2505_v11, %v2003_v9  ;;  %v2114_v2 = vmax.f32 %v2092_v7, 0.0 }
 0x3c3   :  { %v2101_v6 = vpop.f32.mrf.mxu1 }
 0x3c4   :  { %v2117_v32 = vmax.f32 %v2107_v34, 0.0  ;;  %v2102_v53 = vadd.f32 %v2101_v6, %v1998_v19 }
 0x3c6   :  { %v2116_v36 = vmax.f32 %v2102_v53, 0.0  ;;  %2506 = vmatprep.subr.mxu0 %v2117_v32 }
 0x3c7   :  { %2507 = vmatpush3.msra.mxu0 %v2117_v32 }
 0x3c8   :  { %2508 = vmatprep.subr.mxu0 %v2116_v36 }
 0x3c9   :  { %2509 = vmatpush3.msra.mxu0 %v2116_v36 }
 0x3ca   :  { %2510 = vmatprep.subr.mxu0 %v2115_v25 }
 0x3cb   :  { %2511 = vmatpush3.msra.mxu0 %v2115_v25 }
 0x3cc   :  { %2512 = vmatprep.subr.mxu0 %v2114_v2 }
 0x3cd   :  { %2513 = vmatpush3.msra.mxu0 %v2114_v2 }
 0x3ce   :  { %2514 = vmatprep.subr.mxu0 %v2113_v40 }
 0x3cf   :  { %2515 = vmatpush3.msra.mxu0 %v2113_v40 }
 0x3d0   :  { %2516 = vmatprep.subr.mxu0 %v2112_v35 }
 0x3d1   :  { %2517 = vmatpush3.msra.mxu0 %v2112_v35 }
 0x3d2   :  { %2518 = vmatprep.subr.mxu0 %v2111_v48 }
 0x3d3   :  { %2519 = vmatpush3.msra.mxu0 %v2111_v48 }
 0x3d4   :  { %2520 = vmatprep.subr.mxu0 %v2110_v33 }
 0x3d5   :  { %2521 = vmatpush3.msra.mxu0 %v2110_v33 }
 0x3d6   :  { %2523 = vmatmul.mubr.msk.f32.vlgmr.msra.gmra.mxu0 %vm2146_vm9, %v2119_v28  ;;  %2528 = vmatprep.subr.mxu0 %v2590_v60 }
 0x3d7   :  { %2525 = vmatprep.mubr.msk.f32.mxu0 %vm2146_vm9, %v2120_v43 }
 0x3da   :  { %2526 = vmatmul.mubr.msk.f32.gmra.mxu0 %vm2146_vm9, %v2121_v13 }
 0x3db   :  { %2536 = vmatprep.mubr.msk.f32.mxu0 %vm2591_vm10, %v2590_v60 }
 0x496   :  { %v2524_v20 = vpop.f32.mrf.mxu0 }
 0x497   :  { %v2231_v49 = vadd.f32 %v2524_v20, %v2134_v50 }
 0x498   :  { %v2225_v1 = vpop.f32.mrf.mxu0 }
 0x499   :  { %v2226_v15 = vadd.f32 %v2225_v1, %v2129_v18  ;;  %v2245_v8 = vmax.f32 %v2231_v49, 0.0 }
 0x49a   :  { %v2527_v56 = vpop.f32.mrf.mxu0 }
 0x49b   :  { %v2241_v47 = vadd.f32 %v2527_v56, %v2144_v37  ;;  %v2244_v63 = vmax.f32 %v2226_v15, 0.0 }
 0x49c   :  { %v2235_v31 = vpop.f32.mrf.mxu0 }
 0x49d   :  { %v2247_v62 = vmax.f32 %v2241_v47, 0.0  ;;  %v2236_v26 = vadd.f32 %v2235_v31, %v2139_v57 }
 0x49f   :  { %v2246_v5 = vmax.f32 %v2236_v26, 0.0  ;;  %2529 = vmatpush3.msra.mxu0 %v2247_v62 }
 0x4a0   :  { %2530 = vmatprep.subr.mxu0 %v2590_v60 }
 0x4a1   :  { %2531 = vmatpush3.msra.mxu0 %v2246_v5 }
 0x4a2   :  { %2532 = vmatprep.subr.mxu0 %v2590_v60 }
 0x4a3   :  { %2533 = vmatpush3.msra.mxu0 %v2245_v8 }
 0x4a4   :  { %2534 = vmatprep.subr.mxu0 %v2590_v60 }
 0x4a5   :  { %2535 = vmatpush3.msra.mxu0 %v2244_v63 }
 0x4a6   :  { %2537 = vmatmul.mubr.msk.f32.vlgmr.msra.gmra.mxu0 %vm1622_vm0, %v2248_v3 }
 0x566   :  { %v2328_v55 = vpop.f32.mrf.mxu0 }
 0x567   :  { %v2329_v4 = vadd.f32 %v2328_v55, %v2258_v52 }
 0x568   :  { %v2538_v24 = vpop.f32.mrf.mxu0 }
 0x569   :  { %2333 = vst.msk [vmem:[#allocation4] sm:$0x1] %vm2332_vm11, %v2329_v4 }
 0x56a   :  { %2574 = shalt.err (!%p2571_p4)
}
 0x56b   :  { %2343 = dma.vmem_to_hbm [thread:$0]  %s2341_s4, 16, %s3926_s11, [#allocation5]  }
 0x56c   :  { %2583 = dma.done.wait [#allocation5], 16  }
 0x56d   :  { %2584 = vsyncadd [#allocation5], 4294967280 }
 0x56e   :  { %2347 = vsyncpa [#allocation5], 1 }

</bundles_post_ra>
